<compile_context>
chip_gen: v6e
topology: v6e:2x2x1
jax: 0.10.0
libtpu: 0.0.40
codegen_flags: <defaults>
</compile_context>

<pallas_src>
import functools

import jax
import jax.numpy as jnp
import numpy as np
from jax.experimental import pallas as pl
from jax.experimental.pallas import tpu as pltpu


# ---------------------------------------------------------------------------
# Fused per-batch kernel (QKV proj + multi-head RPE attention + output proj)
# ---------------------------------------------------------------------------
def _fused_attn_kernel(x_ref, wqkv_ref, wproj_ref, bproj_ref, rpk_ref, rpv_ref,
                       o_ref, *, num_heads, scale):
    # x_ref:    (N, C)    f32   per-batch activations (blocked over B)
    # wqkv_ref: (C, 3C)   bf16  qkv weight (pre-transposed; qkv_bias=False)
    # wproj_ref:(C, C)    bf16  output projection weight (pre-transposed)
    # bproj_ref:(1, C)    f32   output projection bias
    # rpk_ref:  (N, N, d) bf16  relative-position embeddings for keys
    # rpv_ref:  (N, N, d) bf16  relative-position embeddings for values
    # o_ref:    (N, C)    f32   per-batch output, heads concatenated on lanes
    N, C = x_ref.shape
    H = num_heads
    d = C // H

    # ---- QKV projection on the MXU (bf16 operands, f32 accumulation) ----
    x_bf = x_ref[...].astype(jnp.bfloat16)
    qkv = jax.lax.dot_general(
        x_bf, wqkv_ref[...], (((1,), (0,)), ((), ())),
        preferred_element_type=jnp.float32)                     # (N, 3C) f32

    rpk = rpk_ref[...]                                          # (N, N, d) bf16
    rpv = rpv_ref[...]                                          # (N, N, d) bf16

    head_outs = []
    for h in range(H):  # static unroll over heads (H is small / compile-time)
        # Pre-scale q once: both the content and rel-pos-K logits are linear
        # in q, so this replaces the (N, N) logits scale multiply.
        q = (qkv[:, h * d:(h + 1) * d] * scale).astype(jnp.bfloat16)       # (N, d)
        k = qkv[:, C + h * d:C + (h + 1) * d].astype(jnp.bfloat16)         # (N, d)
        v = qkv[:, 2 * C + h * d:2 * C + (h + 1) * d].astype(jnp.bfloat16)  # (N, d)

        # content logits: q @ k^T (MXU)
        s = jax.lax.dot_general(q, k, (((1,), (1,)), ((), ())),
                                preferred_element_type=jnp.float32)        # (N, N)

        # relative-position K logits on the MXU:
        #   rpe_k[i, j] = sum_d q[i, d] * rpk[i, j, d]   (batch dim = row i)
        rpe_k = jnp.einsum("nqd,nkd->nqk", q[:, None, :], rpk,
                           preferred_element_type=jnp.float32)[:, 0, :]    # (N, N)

        logits = s + rpe_k

        # softmax over keys, kept in f32 (VPU max/exp, EUP reciprocal)
        m = jnp.max(logits, axis=-1, keepdims=True)
        e = jnp.exp(logits - m)
        p = e * pl.reciprocal(jnp.sum(e, axis=-1, keepdims=True), approx=True)
        p_bf = p.astype(jnp.bfloat16)                                      # (N, N)

        # context: p @ v (MXU)
        ctx = jax.lax.dot_general(p_bf, v, (((1,), (0,)), ((), ())),
                                  preferred_element_type=jnp.float32)      # (N, d)

        # relative-position V term on the MXU:
        #   rpe_v[i, e] = sum_j p[i, j] * rpv[i, j, e]
        rpe_v = jnp.einsum("nqk,nkd->nqd", p_bf[:, None, :], rpv,
                           preferred_element_type=jnp.float32)[:, 0, :]    # (N, d)

        head_outs.append(ctx + rpe_v)

    attn_out = jnp.concatenate(head_outs, axis=-1)                         # (N, C)

    # ---- output projection (MXU) + bias ----
    proj = jax.lax.dot_general(
        attn_out.astype(jnp.bfloat16), wproj_ref[...], (((1,), (0,)), ((), ())),
        preferred_element_type=jnp.float32)                                # (N, C)
    o_ref[...] = (proj + bproj_ref[...]).astype(o_ref.dtype)
    # TODO(synk): attn_drop / proj_drop are 0.0 (identity) -> omitted.


# ---------------------------------------------------------------------------
# Glue: RelativePosition2D (index-table build + embedding gather, host-side)
# ---------------------------------------------------------------------------
def relative_position_2d(table_v, table_h, length_q, length_k, length):
    lq, lk = length_q - 1, length_k - 1
    s = int(lq ** 0.5)
    rq = jnp.arange(lq)
    rk = jnp.arange(lk)
    dv = rk[None, :] // s - rq[:, None] // s
    dh = rk[None, :] % s - rq[:, None] % s
    fv = jnp.clip(dv, -length, length) + length + 1
    fh = jnp.clip(dh, -length, length) + length + 1
    fv = jnp.pad(fv, ((1, 0), (1, 0)), constant_values=0)
    fh = jnp.pad(fh, ((1, 0), (1, 0)), constant_values=0)
    return table_v[fv] + table_h[fh]  # (length_q, length_k, head_dim)


# ---------------------------------------------------------------------------
# Full forward (rpe=True, qkv_bias=False, attn_drop=proj_drop=0.0)
# ---------------------------------------------------------------------------
def relative_position_attention(x, params, *, num_heads, rpe_length):
    B, N, C = x.shape
    H = num_heads
    d = C // H
    scale = d ** (-0.5)

    # Relative-position embedding gathers (one-time host glue).
    rpk = relative_position_2d(
        params["rpk_table_v"], params["rpk_table_h"], N, N, rpe_length)
    rpv = relative_position_2d(
        params["rpv_table_v"], params["rpv_table_h"], N, N, rpe_length)
    # Guard the fixed_head_dim vs head_dim hazard (must coincide for rpe=True).
    assert rpk.shape[-1] == d and rpv.shape[-1] == d, (
        "RPE table head dim must equal embed_dim // num_heads")

    # Weight prep: transpose to (in, out); store matmul operands in bf16
    # (f32 accumulation happens in-kernel).  qkv_bias=False -> no qkv bias.
    wqkv = params["w_qkv"].T.astype(jnp.bfloat16)          # (C, 3C)
    wproj = params["w_proj"].T.astype(jnp.bfloat16)        # (C, C)
    bproj = params["b_proj"].reshape(1, C).astype(jnp.float32)

    kern = functools.partial(_fused_attn_kernel, num_heads=H, scale=scale)

    # Grid-invariant operands live in VMEM once (no per-step double buffering).
    vmem_resident = lambda: pl.BlockSpec(memory_space=pltpu.MemorySpace.VMEM)

    out = pl.pallas_call(
        kern,
        out_shape=jax.ShapeDtypeStruct((B, N, C), jnp.float32),
        grid=(B,),
        in_specs=[
            pl.BlockSpec((None, N, C), lambda b: (b, 0, 0)),   # x, per batch
            vmem_resident(),                                   # wqkv
            vmem_resident(),                                   # wproj
            vmem_resident(),                                   # bproj
            vmem_resident(),                                   # rpk
            vmem_resident(),                                   # rpv
        ],
        out_specs=pl.BlockSpec((None, N, C), lambda b: (b, 0, 0)),
        compiler_params=pltpu.CompilerParams(
            dimension_semantics=("parallel",)),
    )(x, wqkv, wproj, bproj,
      rpk.astype(jnp.bfloat16), rpv.astype(jnp.bfloat16))
    return out


# Pure-JAX f32 reference (mirrors the PyTorch forward) for a correctness check.
def _reference(x, params, *, num_heads, rpe_length):
    B, N, C = x.shape
    H = num_heads
    d = C // H
    scale = d ** (-0.5)
    qkv = x @ params["w_qkv"].T
    qkv = qkv.reshape(B, N, 3, H, d).transpose(2, 0, 3, 1, 4)
    q, k, v = qkv[0], qkv[1], qkv[2]
    attn = jnp.einsum("bhnd,bhmd->bhnm", q, k) * scale
    rpk = relative_position_2d(
        params["rpk_table_v"], params["rpk_table_h"], N, N, rpe_length)
    attn = attn + jnp.einsum("bhnd,nmd->bhnm", q, rpk) * scale
    attn = jax.nn.softmax(attn, axis=-1)
    xo = jnp.einsum("bhnm,bhmd->bhnd", attn, v)
    rpv = relative_position_2d(
        params["rpv_table_v"], params["rpv_table_h"], N, N, rpe_length)
    xo = xo + jnp.einsum("bhnm,nmd->bhnd", attn, rpv)
    xo = xo.transpose(0, 2, 1, 3).reshape(B, N, C)
    return xo @ params["w_proj"].T + params["b_proj"]


if __name__ == "__main__":
    # Small config: embed_dim=32, 2 heads (head_dim=16), N = 1 cls + 4x4 patches.
    B = 2
    num_heads = 2
    embed_dim = 32
    fixed_embed_dim = 32
    rpe_length = 14
    N = 1 + 4 * 4  # 17
    head_dim = embed_dim // num_heads
    fixed_head_dim = fixed_embed_dim // num_heads
    tbl_rows = 2 * rpe_length + 2

    key = jax.random.PRNGKey(0)
    ks = jax.random.split(key, 8)
    params = {
        "w_qkv": jax.random.normal(ks[0], (3 * embed_dim, embed_dim), jnp.float32)
        * 0.05,
        "w_proj": jax.random.normal(ks[1], (embed_dim, embed_dim), jnp.float32)
        * 0.05,
        "b_proj": jax.random.normal(ks[2], (embed_dim,), jnp.float32) * 0.02,
        "rpk_table_v": jax.random.normal(ks[3], (tbl_rows, fixed_head_dim)) * 0.02,
        "rpk_table_h": jax.random.normal(ks[4], (tbl_rows, fixed_head_dim)) * 0.02,
        "rpv_table_v": jax.random.normal(ks[5], (tbl_rows, fixed_head_dim)) * 0.02,
        "rpv_table_h": jax.random.normal(ks[6], (tbl_rows, fixed_head_dim)) * 0.02,
    }
    x = jax.random.normal(ks[7], (B, N, embed_dim), jnp.float32)

    out = relative_position_attention(
        x, params, num_heads=num_heads, rpe_length=rpe_length)
    out = jax.block_until_ready(out)

    ref = _reference(x, params, num_heads=num_heads, rpe_length=rpe_length)
    # bf16 MXU operands (f32 accumulation) -> slightly looser tolerance than f32.
    np.testing.assert_allclose(np.asarray(out), np.asarray(ref), rtol=2e-2, atol=3e-3)

    print("KERNEL_OK")
</pallas_src>

<mosaic_0001>
module attributes {stable_mosaic.version = 11 : i64} {
  func.func @_fused_attn_kernel(%arg0: i32, %arg1: memref<1x17x32xf32, #tpu.memory_space<vmem>>, %arg2: memref<32x96xbf16, #tpu.memory_space<vmem>>, %arg3: memref<32x32xbf16, #tpu.memory_space<vmem>>, %arg4: memref<1x32xf32, #tpu.memory_space<vmem>>, %arg5: memref<17x17x16xbf16, #tpu.memory_space<vmem>>, %arg6: memref<17x17x16xbf16, #tpu.memory_space<vmem>>, %arg7: memref<1x17x32xf32, #tpu.memory_space<vmem>>) attributes {dimension_semantics = [#tpu.dimension_semantics<parallel>], iteration_bounds = array<i64: 2>, scalar_prefetch = 0 : i64, scratch_operands = 0 : i64, tpu.core_type = #tpu.core_type<tc>, window_params = [{transform_indices = @transform_0, window_bounds = array<i64: 1, 17, 32>}, {pipeline_mode = #tpu.pipeline_mode<synchronous>, transform_indices = @transform_1, window_bounds = array<i64: 32, 96>}, {pipeline_mode = #tpu.pipeline_mode<synchronous>, transform_indices = @transform_2, window_bounds = array<i64: 32, 32>}, {pipeline_mode = #tpu.pipeline_mode<synchronous>, transform_indices = @transform_3, window_bounds = array<i64: 1, 32>}, {pipeline_mode = #tpu.pipeline_mode<synchronous>, transform_indices = @transform_4, window_bounds = array<i64: 17, 17, 16>}, {pipeline_mode = #tpu.pipeline_mode<synchronous>, transform_indices = @transform_5, window_bounds = array<i64: 17, 17, 16>}, {transform_indices = @transform_6, window_bounds = array<i64: 1, 17, 32>}]} {
    %c0 = arith.constant 0 : index
    %c0_0 = arith.constant 0 : index
    %c0_1 = arith.constant 0 : index
    %0 = vector.load %arg1[%c0, %c0_0, %c0_1] : memref<1x17x32xf32, #tpu.memory_space<vmem>>, vector<1x17x32xf32>
    %1 = vector.shape_cast %0 : vector<1x17x32xf32> to vector<17x32xf32>
    %2 = arith.truncf %1 : vector<17x32xf32> to vector<17x32xbf16>
    %c0_2 = arith.constant 0 : index
    %c0_3 = arith.constant 0 : index
    %3 = vector.load %arg2[%c0_2, %c0_3] : memref<32x96xbf16, #tpu.memory_space<vmem>>, vector<32x96xbf16>
    %cst = arith.constant dense<0.000000e+00> : vector<17x96xf32>
    %4 = tpu.matmul %2, %3, %cst {dimension_numbers = #tpu.dot_dimension_numbers<[1], [0], [0], [1], [0, 0, 1, 1], [], []>} : vector<17x32xbf16>, vector<32x96xbf16>, vector<17x96xf32> -> vector<17x96xf32>
    %c0_4 = arith.constant 0 : index
    %c0_5 = arith.constant 0 : index
    %c0_6 = arith.constant 0 : index
    %5 = vector.load %arg5[%c0_4, %c0_5, %c0_6] : memref<17x17x16xbf16, #tpu.memory_space<vmem>>, vector<17x17x16xbf16>
    %c0_7 = arith.constant 0 : index
    %c0_8 = arith.constant 0 : index
    %c0_9 = arith.constant 0 : index
    %6 = vector.load %arg6[%c0_7, %c0_8, %c0_9] : memref<17x17x16xbf16, #tpu.memory_space<vmem>>, vector<17x17x16xbf16>
    %7 = vector.extract_strided_slice %4 {offsets = [0, 0], sizes = [17, 16], strides = [1, 1]} : vector<17x96xf32> to vector<17x16xf32>
    %cst_10 = arith.constant 2.500000e-01 : f32
    %8 = vector.broadcast %cst_10 : f32 to vector<17x16xf32>
    %9 = arith.mulf %7, %8 : vector<17x16xf32>
    %10 = arith.truncf %9 : vector<17x16xf32> to vector<17x16xbf16>
    %11 = vector.extract_strided_slice %4 {offsets = [0, 32], sizes = [17, 16], strides = [1, 1]} : vector<17x96xf32> to vector<17x16xf32>
    %12 = arith.truncf %11 : vector<17x16xf32> to vector<17x16xbf16>
    %13 = vector.extract_strided_slice %4 {offsets = [0, 64], sizes = [17, 16], strides = [1, 1]} : vector<17x96xf32> to vector<17x16xf32>
    %14 = arith.truncf %13 : vector<17x16xf32> to vector<17x16xbf16>
    %cst_11 = arith.constant dense<0.000000e+00> : vector<17x17xf32>
    %15 = tpu.matmul %10, %12, %cst_11 {dimension_numbers = #tpu.dot_dimension_numbers<[1], [1], [0], [0], [0, 0, 1, 0], [], []>} : vector<17x16xbf16>, vector<17x16xbf16>, vector<17x17xf32> -> vector<17x17xf32>
    %16 = vector.shape_cast %10 : vector<17x16xbf16> to vector<17x1x16xbf16>
    "tpu.trace_start"() <{level = 10 : i32, message = "nqd,nkd->nqk"}> : () -> ()
    %cst_12 = arith.constant dense<0.000000e+00> : vector<17x1x17xf32>
    %17 = tpu.matmul %16, %5, %cst_12 {dimension_numbers = #tpu.dot_dimension_numbers<[2], [2], [1], [1], [0, 0, 0, 1, 1, 1], [0], [0]>} : vector<17x1x16xbf16>, vector<17x17x16xbf16>, vector<17x1x17xf32> -> vector<17x1x17xf32>
    "tpu.trace_stop"() : () -> ()
    %18 = vector.shape_cast %17 : vector<17x1x17xf32> to vector<17x17xf32>
    %19 = arith.addf %15, %18 : vector<17x17xf32>
    %cst_13 = arith.constant dense<0xFF800000> : vector<17xf32>
    %20 = vector.multi_reduction <maximumf>, %19, %cst_13 [1] : vector<17x17xf32> to vector<17xf32>
    %21 = vector.shape_cast %20 : vector<17xf32> to vector<17x1xf32>
    %22 = vector.broadcast %21 : vector<17x1xf32> to vector<17x17xf32>
    %23 = arith.subf %19, %22 : vector<17x17xf32>
    %24 = math.exp %23 : vector<17x17xf32>
    %cst_14 = arith.constant dense<0.000000e+00> : vector<17xf32>
    %25 = vector.multi_reduction <add>, %24, %cst_14 [1] : vector<17x17xf32> to vector<17xf32>
    %26 = vector.shape_cast %25 : vector<17xf32> to vector<17x1xf32>
    %27 = tpu.reciprocal %26 {approx = true} : vector<17x1xf32> -> vector<17x1xf32>
    %28 = vector.broadcast %27 : vector<17x1xf32> to vector<17x17xf32>
    %29 = arith.mulf %24, %28 : vector<17x17xf32>
    %30 = arith.truncf %29 : vector<17x17xf32> to vector<17x17xbf16>
    %cst_15 = arith.constant dense<0.000000e+00> : vector<17x16xf32>
    %31 = tpu.matmul %30, %14, %cst_15 {dimension_numbers = #tpu.dot_dimension_numbers<[1], [0], [0], [1], [0, 0, 1, 1], [], []>} : vector<17x17xbf16>, vector<17x16xbf16>, vector<17x16xf32> -> vector<17x16xf32>
    %32 = vector.shape_cast %30 : vector<17x17xbf16> to vector<17x1x17xbf16>
    "tpu.trace_start"() <{level = 10 : i32, message = "nqk,nkd->nqd"}> : () -> ()
    %cst_16 = arith.constant dense<0.000000e+00> : vector<17x1x16xf32>
    %33 = tpu.matmul %32, %6, %cst_16 {dimension_numbers = #tpu.dot_dimension_numbers<[2], [1], [1], [2], [0, 0, 0, 1, 1, 2], [0], [0]>} : vector<17x1x17xbf16>, vector<17x17x16xbf16>, vector<17x1x16xf32> -> vector<17x1x16xf32>
    "tpu.trace_stop"() : () -> ()
    %34 = vector.shape_cast %33 : vector<17x1x16xf32> to vector<17x16xf32>
    %35 = arith.addf %31, %34 : vector<17x16xf32>
    %36 = vector.extract_strided_slice %4 {offsets = [0, 16], sizes = [17, 16], strides = [1, 1]} : vector<17x96xf32> to vector<17x16xf32>
    %cst_17 = arith.constant 2.500000e-01 : f32
    %37 = vector.broadcast %cst_17 : f32 to vector<17x16xf32>
    %38 = arith.mulf %36, %37 : vector<17x16xf32>
    %39 = arith.truncf %38 : vector<17x16xf32> to vector<17x16xbf16>
    %40 = vector.extract_strided_slice %4 {offsets = [0, 48], sizes = [17, 16], strides = [1, 1]} : vector<17x96xf32> to vector<17x16xf32>
    %41 = arith.truncf %40 : vector<17x16xf32> to vector<17x16xbf16>
    %42 = vector.extract_strided_slice %4 {offsets = [0, 80], sizes = [17, 16], strides = [1, 1]} : vector<17x96xf32> to vector<17x16xf32>
    %43 = arith.truncf %42 : vector<17x16xf32> to vector<17x16xbf16>
    %cst_18 = arith.constant dense<0.000000e+00> : vector<17x17xf32>
    %44 = tpu.matmul %39, %41, %cst_18 {dimension_numbers = #tpu.dot_dimension_numbers<[1], [1], [0], [0], [0, 0, 1, 0], [], []>} : vector<17x16xbf16>, vector<17x16xbf16>, vector<17x17xf32> -> vector<17x17xf32>
    %45 = vector.shape_cast %39 : vector<17x16xbf16> to vector<17x1x16xbf16>
    "tpu.trace_start"() <{level = 10 : i32, message = "nqd,nkd->nqk"}> : () -> ()
    %cst_19 = arith.constant dense<0.000000e+00> : vector<17x1x17xf32>
    %46 = tpu.matmul %45, %5, %cst_19 {dimension_numbers = #tpu.dot_dimension_numbers<[2], [2], [1], [1], [0, 0, 0, 1, 1, 1], [0], [0]>} : vector<17x1x16xbf16>, vector<17x17x16xbf16>, vector<17x1x17xf32> -> vector<17x1x17xf32>
    "tpu.trace_stop"() : () -> ()
    %47 = vector.shape_cast %46 : vector<17x1x17xf32> to vector<17x17xf32>
    %48 = arith.addf %44, %47 : vector<17x17xf32>
    %cst_20 = arith.constant dense<0xFF800000> : vector<17xf32>
    %49 = vector.multi_reduction <maximumf>, %48, %cst_20 [1] : vector<17x17xf32> to vector<17xf32>
    %50 = vector.shape_cast %49 : vector<17xf32> to vector<17x1xf32>
    %51 = vector.broadcast %50 : vector<17x1xf32> to vector<17x17xf32>
    %52 = arith.subf %48, %51 : vector<17x17xf32>
    %53 = math.exp %52 : vector<17x17xf32>
    %cst_21 = arith.constant dense<0.000000e+00> : vector<17xf32>
    %54 = vector.multi_reduction <add>, %53, %cst_21 [1] : vector<17x17xf32> to vector<17xf32>
    %55 = vector.shape_cast %54 : vector<17xf32> to vector<17x1xf32>
    %56 = tpu.reciprocal %55 {approx = true} : vector<17x1xf32> -> vector<17x1xf32>
    %57 = vector.broadcast %56 : vector<17x1xf32> to vector<17x17xf32>
    %58 = arith.mulf %53, %57 : vector<17x17xf32>
    %59 = arith.truncf %58 : vector<17x17xf32> to vector<17x17xbf16>
    %cst_22 = arith.constant dense<0.000000e+00> : vector<17x16xf32>
    %60 = tpu.matmul %59, %43, %cst_22 {dimension_numbers = #tpu.dot_dimension_numbers<[1], [0], [0], [1], [0, 0, 1, 1], [], []>} : vector<17x17xbf16>, vector<17x16xbf16>, vector<17x16xf32> -> vector<17x16xf32>
    %61 = vector.shape_cast %59 : vector<17x17xbf16> to vector<17x1x17xbf16>
    "tpu.trace_start"() <{level = 10 : i32, message = "nqk,nkd->nqd"}> : () -> ()
    %cst_23 = arith.constant dense<0.000000e+00> : vector<17x1x16xf32>
    %62 = tpu.matmul %61, %6, %cst_23 {dimension_numbers = #tpu.dot_dimension_numbers<[2], [1], [1], [2], [0, 0, 0, 1, 1, 2], [0], [0]>} : vector<17x1x17xbf16>, vector<17x17x16xbf16>, vector<17x1x16xf32> -> vector<17x1x16xf32>
    "tpu.trace_stop"() : () -> ()
    %63 = vector.shape_cast %62 : vector<17x1x16xf32> to vector<17x16xf32>
    %64 = arith.addf %60, %63 : vector<17x16xf32>
    %65 = tpu.concatenate %35, %64 in 1 : vector<17x16xf32>, vector<17x16xf32> -> vector<17x32xf32>
    %66 = arith.truncf %65 : vector<17x32xf32> to vector<17x32xbf16>
    %c0_24 = arith.constant 0 : index
    %c0_25 = arith.constant 0 : index
    %67 = vector.load %arg3[%c0_24, %c0_25] : memref<32x32xbf16, #tpu.memory_space<vmem>>, vector<32x32xbf16>
    %cst_26 = arith.constant dense<0.000000e+00> : vector<17x32xf32>
    %68 = tpu.matmul %66, %67, %cst_26 {dimension_numbers = #tpu.dot_dimension_numbers<[1], [0], [0], [1], [0, 0, 1, 1], [], []>} : vector<17x32xbf16>, vector<32x32xbf16>, vector<17x32xf32> -> vector<17x32xf32>
    %c0_27 = arith.constant 0 : index
    %c0_28 = arith.constant 0 : index
    %69 = vector.load %arg4[%c0_27, %c0_28] : memref<1x32xf32, #tpu.memory_space<vmem>>, vector<1x32xf32>
    %70 = vector.broadcast %69 : vector<1x32xf32> to vector<17x32xf32>
    %71 = arith.addf %68, %70 : vector<17x32xf32>
    %c0_29 = arith.constant 0 : index
    %c0_30 = arith.constant 0 : index
    %c0_31 = arith.constant 0 : index
    %72 = vector.load %arg7[%c0_29, %c0_30, %c0_31] : memref<1x17x32xf32, #tpu.memory_space<vmem>>, vector<1x17x32xf32>
    %73 = vector.shape_cast %72 : vector<1x17x32xf32> to vector<17x32xf32>
    %74 = vector.shape_cast %71 : vector<17x32xf32> to vector<1x17x32xf32>
    tpu.vector_store %arg7[%c0_29, %c0_30, %c0_31], %74 {strides = array<i32>} : memref<1x17x32xf32, #tpu.memory_space<vmem>>, vector<1x17x32xf32>,
    return
  }
  func.func @transform_0(%arg0: i32) -> (i32, i32, i32) {
    %c0_i32 = arith.constant 0 : i32
    %c0_i32_0 = arith.constant 0 : i32
    %c0_i32_1 = arith.constant 0 : i32
    return %arg0, %c0_i32, %c0_i32_0 : i32, i32, i32
  }
  func.func @transform_1(%arg0: i32) -> (i32, i32) {
    %c0_i32 = arith.constant 0 : i32
    %c0_i32_0 = arith.constant 0 : i32
    %c0_i32_1 = arith.constant 0 : i32
    return %c0_i32, %c0_i32_0 : i32, i32
  }
  func.func @transform_2(%arg0: i32) -> (i32, i32) {
    %c0_i32 = arith.constant 0 : i32
    %c0_i32_0 = arith.constant 0 : i32
    %c0_i32_1 = arith.constant 0 : i32
    return %c0_i32, %c0_i32_0 : i32, i32
  }
  func.func @transform_3(%arg0: i32) -> (i32, i32) {
    %c0_i32 = arith.constant 0 : i32
    %c0_i32_0 = arith.constant 0 : i32
    %c0_i32_1 = arith.constant 0 : i32
    return %c0_i32, %c0_i32_0 : i32, i32
  }
  func.func @transform_4(%arg0: i32) -> (i32, i32, i32) {
    %c0_i32 = arith.constant 0 : i32
    %c0_i32_0 = arith.constant 0 : i32
    %c0_i32_1 = arith.constant 0 : i32
    %c0_i32_2 = arith.constant 0 : i32
    return %c0_i32, %c0_i32_0, %c0_i32_1 : i32, i32, i32
  }
  func.func @transform_5(%arg0: i32) -> (i32, i32, i32) {
    %c0_i32 = arith.constant 0 : i32
    %c0_i32_0 = arith.constant 0 : i32
    %c0_i32_1 = arith.constant 0 : i32
    %c0_i32_2 = arith.constant 0 : i32
    return %c0_i32, %c0_i32_0, %c0_i32_1 : i32, i32, i32
  }
  func.func @transform_6(%arg0: i32) -> (i32, i32, i32) {
    %c0_i32 = arith.constant 0 : i32
    %c0_i32_0 = arith.constant 0 : i32
    %c0_i32_1 = arith.constant 0 : i32
    return %arg0, %c0_i32, %c0_i32_0 : i32, i32, i32
  }
}

</mosaic_0001>

<bundles_post_ra>
// kernel: tpu_custom_call.1
= control target key start
LH: loop header
LB: loop body
LE: loop exit
PB: predicated region body
PF: predicated region fallthrough
CT: control target
= control target key end

     0   :  { %s6229_s21 = smov 0   ;;  %s7471_s0 = inlined_call_operand.vmem [shape: f32[2,17,32], index: 0, kind: input, shape index: {}]   ;;  %s7472_s1 = inlined_call_operand.vmem [shape: bf16[32,96], index: 1, kind: input, shape index: {}]   ;;  %s7473_s2 = inlined_call_operand.vmem [shape: bf16[32,32], index: 2, kind: input, shape index: {}]   ;;  %s7474_s3 = inlined_call_operand.vmem [shape: f32[1,32], index: 3, kind: input, shape index: {}]   ;;  %s7475_s4 = inlined_call_operand.vmem [shape: bf16[17,17,16], index: 4, kind: input, shape index: {}]   ;;  %s7476_s5 = inlined_call_operand.vmem [shape: bf16[17,17,16], index: 5, kind: input, shape index: {}]   ;;  %s7477_s6 = inlined_call_operand.vmem [shape: f32[2,17,32], index: 6, kind: output, shape index: {}]  }
   0x1 LB: > { %s5025_s22 = sadd.s32 4294967295, %s6182_s21   ;;  %p5029_p0 = scmp.ge.s32.totalorder %s6182_s21, 1  ;;  %s6182_s21 = sphi %s6229_s21, %s16_s21  }
   0x2   : > { %p212_p1 = scmp.lt.s32.totalorder %s6182_s21, 3 }
   0x4   : > { %p213_p2 = pnand %p5029_p0, %p212_p1 }
   0x6   : > { %216 = sbr.rel (%p213_p2) target bundleno = 2210 (0x8a2), region = 44 }
   0xb   : > { %v6065_v0 = vld [vmem:[%s7472_s1 + $0x8] sm:$0xff]   ;;  %p242_p3 = scmp.lt.s32.totalorder %s5025_s22, 1  ;;  %v6066_v1 = vld [vmem:[%s7472_s1] sm:$0xff]   ;;  %vm274_vm0 = vcmask 261120   ;;  %vm533_vm1 = vcmask 130048   ;;  %v7486_v8 = vmov 0.0   ;;  %v444_v20 = vlaneseq }
   0xc   : > { %5445 = vmatprep.subr.bf16.mxu0 %v6065_v0  ;;  %v6067_v7 = vld [vmem:[%s7475_s4 + $0x8] ss:$0 sps:$4 sm:$0x11]   ;;  %5453 = vmatprep.subr.bf16.mxu1 %v7486_v8  ;;  %v6068_v10 = vld [vmem:[%s7475_s4 + $0x14] ss:$0 sps:$4 sm:$0x11]  }
   0xd   : > { %s7536_s22 = smov (!%p242_p3, %s5025_s22), 1  ;;  %5446 = vmatpush3.bf16.msra.mxu0 %v6065_v0  ;;  %v6258_v9 = vsel %vm533_vm1, %v6067_v7, 0  ;;  %v6266_v11 = vsel %vm533_vm1, %v6068_v10, 0  ;;  %v6069_v12 = vld [vmem:[%s7475_s4] sm:$0xff]   ;;  %v6070_v14 = vld [vmem:[%s7475_s4 + $0xc] sm:$0xff]   ;;  %vm6185_vm2 = vmmov 0  }
   0xe   : > { %5447 = vmatprep.subr.bf16.mxu0 %v6066_v1  ;;  %s6041_s27 = smul.u32 24, %s7536_s22  ;;  %5454 = vmatpush3.bf16.xpose.msra.mxu1 %v6258_v9  ;;  %v6275_v13 = vsel %vm533_vm1, %v6069_v12, 0  ;;  %v6282_v15 = vsel %vm533_vm1, %v6070_v14, 0  ;;  %v6186_v18 = vmov 1966171168   ;;  %s6187_s15 = smov 96  }
   0xf   : > { %5455 = vmatprep.subr.bf16.mxu1 %v7486_v8  ;;  %5457 = vmatprep.mubr.msk.bf16.mxu1 %vm6185_vm2, %v7486_v8  ;;  %v442_v19 = vunpack.c.l.s4 %v6186_v18  ;;  %v445_v24 = vshrl.u32 %v444_v20, 7  ;;  %v6071_v33 = vld [vmem:[%s7475_s4 + $0x20] ss:$0 sps:$4 sm:$0x11]   ;;  %v6073_v44 = vld [vmem:[%s7475_s4 + $0x18] sm:$0xff]   ;;  %v6074_v46 = vld [vmem:[%s7475_s4 + $0x24] sm:$0xff]  }
  0x10   : > { %s246_s30 = scalar_lea.vmem %s7471_s0, %s6041_s27  ;;  %v6072_v37 = vld [vmem:[%s7475_s4 + $0x2c] ss:$0 sps:$4 sm:$0x11]   ;;  %v6323_v39 = vsel %vm533_vm1, %v6071_v33, 0  ;;  %v6351_v47 = vsel %vm533_vm1, %v6073_v44, 0  ;;  %v6354_v48 = vsel %vm533_vm1, %v6074_v46, 0  ;;  %s251_s19 = scalar_lea.vmem %s7477_s6, %s6041_s27 }
  0x11   : > { %5448 = vmatpush3.bf16.msra.mxu0 %v6066_v1  ;;  %v253_v2 = vld [vmem:[%s246_s30] sm:$0xff]  ;;  %v254_v3 = vld [vmem:[%s246_s30 + $0x8] sm:$0xff]  ;;  %v255_v4 = vld [vmem:[%s246_s30 + $0x10] sm:$0x1]  ;;  %v443_v23 = vunpack.c.0.s8 %v442_v19  ;;  %v6314_v34 = vsub.s32 0, %v445_v24  ;;  %v6331_v43 = vsel %vm533_vm1, %v6072_v37, 0 }
  0x12   : > { %v256_v5 = vpack.c.bf16 %v254_v3, %v253_v2  ;;  %v257_v6 = vpack.c.bf16 %v255_v4, %v255_v4  ;;  %5461 = vmatprep.subr.bf16.mxu0 %v7486_v8  ;;  %v6075_v51 = vld [vmem:[%s7475_s4 + $0x38] ss:$0 sps:$4 sm:$0x11]   ;;  %v6076_v53 = vld [vmem:[%s7475_s4 + $0x44] ss:$0 sps:$4 sm:$0x11]  }
  0x13   : > { %v6302_v29 = vsub.s32 %v443_v23, %v445_v24  ;;  %v6370_v55 = vsel %vm533_vm1, %v6075_v51, 0  ;;  %v6378_v57 = vsel %vm533_vm1, %v6076_v53, 0  ;;  %v6077_v58 = vld [vmem:[%s7475_s4 + $0x30] sm:$0xff]   ;;  %v6078_v59 = vld [vmem:[%s7475_s4 + $0x3c] sm:$0xff]   ;;  %v6081_v10 = vld [vmem:[%s7475_s4 + $0x48] sm:$0xff]   ;;  %vm1599_vm3 = vcmask 1041409  }
  0x14   : > { %5449 = vmatprep.mubr.msk.bf16.mxu0 %vm274_vm0, %v256_v5  ;;  %v6397_v61 = vsel %vm533_vm1, %v6077_v58, 0  ;;  %v6400_v62 = vsel %vm533_vm1, %v6078_v59, 0  ;;  %v6079_v1 = vld [vmem:[%s7475_s4 + $0x50] ss:$0 sps:$4 sm:$0x11]   ;;  %v6082_v12 = vld [vmem:[%s7475_s4 + $0x54] sm:$0xff]  }
  0x15   : > { %5450 = vmatmul.mubr.msk.bf16.vlgmr.msra.gmra.mxu0 %vm274_vm0, %v257_v6  ;;  %v6080_v3 = vld [vmem:[%s7475_s4 + $0x5c] ss:$0 sps:$4 sm:$0x11]   ;;  %v6416_v5 = vsel %vm533_vm1, %v6079_v1, 0  ;;  %v6443_v18 = vsel %vm533_vm1, %v6081_v10, 0  ;;  %v6446_v19 = vsel %vm533_vm1, %v6082_v12, 0 }
  0x16   : > { %5462 = vmatpush3.bf16.xpose.msra.mxu0 %v6266_v11  ;;  %5456 = vmatpush3.bf16.xpose.msra.mxu1 %v6275_v13  ;;  %v6424_v7 = vsel %vm533_vm1, %v6080_v3, 0  ;;  %v6086_v37 = vld [vmem:[%s7475_s4 + $0x6c] sm:$0xff]   ;;  %v6087_v46 = vld [vmem:[%s7475_s4 + $0x80] ss:$0 sps:$4 sm:$0x11]   ;;  %vm1602_vm4 = vcmask 1042434  }
  0x17   : > { %5463 = vmatprep.subr.bf16.mxu0 %v7486_v8  ;;  %5469 = vmatprep.subr.bf16.mxu1 %v7486_v8  ;;  %v6496_v44 = vsel %vm533_vm1, %v6086_v37, 0  ;;  %v6091_v12 = vld [vmem:[%s7475_s4 + $0x98] ss:$0 sps:$4 sm:$0x11]   ;;  %vm1605_vm5 = vcmask 1043459   ;;  %vm1608_vm6 = vcmask 1044484  }
  0x18   : > { %5465 = vmatprep.mubr.msk.bf16.mxu0 %vm6185_vm2, %v7486_v8  ;;  %7501 = vst [vmem:[#allocation5_spill] sm:$0xff] %v6496_v44  ;;  %vm1611_vm7 = vcmask 1045509   ;;  %vm1614_vm8 = vcmask 1046534   ;;  %vm1617_vm9 = vcmask 1047559   ;;  %vm1703_vm10 = vcmask 131072   ;;  %s6188_s13 = smov 112  }
  0x19   : > { %vm1696_vm11 = vcmask 138240   ;;  %s6189_s14 = smov 80   ;;  %vm1832_vm12 = vcmask 1040384   ;;  %s6192_s23 = smov 48   ;;  %vm4968_vm13 = vcmask 253952  }
  0x1e   : > { %5464 = vmatpush3.bf16.xpose.msra.mxu0 %v6282_v15 }
  0x1f   : > { %5477 = vmatprep.subr.bf16.mxu0 %v7486_v8 }
  0xd5   : > { %v6291_v16 = vpop.f32.mrf.mxu0 }
  0xd6   : > { %v6295_v17 = vpack.c.bf16 %v6291_v16, %v6291_v16 }
  0xd7   : > { %v315_v21 = vpop.f32.mrf.mxu0 }
  0xd8   : > { %1579 = vrot.lane.b32.xlu0 %v6295_v17, %s6187_s15  ;;  %v431_v26 = vmul.f32 0.25, %v315_v21 }
  0xd9   : > { %v5452_v22 = vpop.f32.mrf.mxu0 }
  0xda   : > { %v6083_v22 = vld [vmem:[%s7475_s4 + $0x68] ss:$0 sps:$4 sm:$0x11]  }
  0xdb   : > { %v318_v25 = vpop.f32.mrf.mxu0 }
  0xdc   : > { %v6298_v27 = vmul.f32 0.25, %v318_v25  ;;  %v6300_v28 = vpack.c.bf16 %v318_v25, %v315_v21  ;;  %v6084_v25 = vld [vmem:[%s7475_s4 + $0x74] ss:$0 sps:$4 sm:$0x11]  }
  0xdd   : > { %v6473_v33 = vsel %vm533_vm1, %v6084_v25, 0  ;;  %v6093_v25 = vld [vmem:[%s7475_s4 + $0x90] sm:$0xff]  }
  0xde   : > { %v6305_v30 = vpack.c.bf16 %v6298_v27, %v431_v26  ;;  %1577 = vrot.lane.b32.xlu0 %v6300_v28, %s6187_s15  ;;  %v5036_v23 = vpack.c.bf16 %v6298_v27, %v6298_v27  ;;  %7499 = vst [vmem:[#allocation3_spill] sm:$0xff] %v6473_v33  ;;  %v6586_v37 = vsel %vm533_vm1, %v6093_v25, 0  ;;  %s6190_s15 = smov 64  }
  0xdf   : > { %7508 = vst [vmem:[#allocation12_spill] sm:$0xff] %v6586_v37 }
  0xe0   : > { %v447_v31 = vrot.slane %v6305_v30, %v6302_v29 }
  0xe2   : > { %v463_v32 = vrot.slane %v447_v31, %v6302_v29  ;;  %v455_v41 = vcombine.high %v447_v31, %v447_v31  ;;  %v6464_v31 = vsel %vm533_vm1, %v6083_v22, 0  ;;  %v6559_v22 = vsel %vm533_vm1, %v6091_v12, 0  ;;  %v6098_v12 = vld [vmem:[%s7475_s4 + $0xb4] sm:$0xff]  }
  0xe3   : > { %7498 = vst [vmem:[#allocation2_spill] sm:$0xff] %v6464_v31  ;;  %7506 = vst [vmem:[#allocation10_spill] sm:$0xff] %v6559_v22  ;;  %v6635_v25 = vsel %vm533_vm1, %v6098_v12, 0 }
  0xe4   : > { %v5037_v35 = vpack.i.b16 %v463_v32, %v463_v32  ;;  %v504_v36 = vunpack.i.h.s16 %v463_v32  ;;  %v477_v45 = vrot.slane %v455_v41, %v6302_v29  ;;  %v485_v60 = vcombine.high %v463_v32, %v463_v32  ;;  %7513 = vst [vmem:[#allocation17_spill] sm:$0xff] %v6635_v25 }
  0xe5   : > { %v454_v32 = vrot.slane %v5036_v23, %v6302_v29 }
  0xe6   : > { %v6320_v38 = vrot.slane %v5037_v35, %v6314_v34  ;;  %v583_v40 = vpack.i.b16 %v504_v36, %v504_v36  ;;  %v506_v49 = vunpack.i.h.s16 %v477_v45  ;;  %v5044_v50 = vpack.i.b16 %v477_v45, %v477_v45  ;;  %v6085_v35 = vld [vmem:[%s7475_s4 + $0x60] sm:$0xff]  }
  0xe7   : > { %v508_v63 = vunpack.i.h.s16 %v485_v60  ;;  %v5051_v0 = vpack.i.b16 %v485_v60, %v485_v60  ;;  %v487_v14 = vcombine.high %v477_v45, %v477_v45  ;;  %v470_v36 = vrot.slane %v454_v32, %v6302_v29  ;;  %v6089_v60 = vld [vmem:[%s7475_s4 + $0x78] sm:$0xff]  }
  0xe8   : > { %5458 = vmatmul.mubr.msk.bf16.vlgmr.msra.gmra.mxu1 %vm533_vm1, %v6320_v38  ;;  %v6328_v42 = vrot.slane %v583_v40, %v6314_v34  ;;  %v707_v52 = vpack.i.b16 %v506_v49, %v506_v49  ;;  %v6367_v54 = vrot.slane %v5044_v50, %v6314_v34  ;;  %v6493_v40 = vsel %vm533_vm1, %v6085_v35, 0  ;;  %v6088_v50 = vld [vmem:[%s7475_s4 + $0x8c] ss:$0 sps:$4 sm:$0x11]   ;;  %v6094_v35 = vld [vmem:[%s7475_s4 + $0x9c] sm:$0xff]  }
  0xe9   : > { %5470 = vmatpush3.bf16.xpose.msra.mxu1 %v6323_v39  ;;  %5473 = vmatprep.mubr.msk.bf16.mxu1 %vm6185_vm2, %v7486_v8  ;;  %v831_v2 = vpack.i.b16 %v508_v63, %v508_v63  ;;  %v6413_v4 = vrot.slane %v5051_v0, %v6314_v34  ;;  %v510_v20 = vunpack.i.h.s16 %v487_v14  ;;  %v5058_v21 = vpack.i.b16 %v487_v14, %v487_v14  ;;  %v6090_v0 = vld [vmem:[%s7475_s4 + $0x84] sm:$0xff]  }
  0xea   : > { %5466 = vmatmul.mubr.msk.bf16.vlgmr.msra.gmra.mxu0 %vm533_vm1, %v6328_v42  ;;  %5471 = vmatprep.subr.bf16.mxu1 %v7486_v8  ;;  %v6375_v56 = vrot.slane %v707_v52, %v6314_v34  ;;  %7500 = vst [vmem:[#allocation4_spill] sm:$0xff] %v6493_v40  ;;  %v512_v41 = vunpack.i.h.s16 %v470_v36  ;;  %v5065_v45 = vpack.i.b16 %v470_v36, %v470_v36  ;;  %v6512_v52 = vsel %vm533_vm1, %v6087_v46, 0 }
  0xeb   : > { %5478 = vmatpush3.bf16.xpose.msra.mxu0 %v6331_v43  ;;  %5481 = vmatprep.mubr.msk.bf16.mxu0 %vm6185_vm2, %v7486_v8  ;;  %v6421_v6 = vrot.slane %v831_v2, %v6314_v34  ;;  %v955_v24 = vpack.i.b16 %v510_v20, %v510_v20  ;;  %v6461_v26 = vrot.slane %v5058_v21, %v6314_v34  ;;  %v6520_v59 = vsel %vm533_vm1, %v6088_v50, 0  ;;  %v6092_v20 = vld [vmem:[%s7475_s4 + $0xa4] ss:$0 sps:$4 sm:$0x11]  }
  0xec   : > { %5479 = vmatprep.subr.bf16.mxu0 %v7486_v8  ;;  %v1079_v49 = vpack.i.b16 %v512_v41, %v512_v41  ;;  %v6509_v51 = vrot.slane %v5065_v45, %v6314_v34  ;;  %7502 = vst [vmem:[#allocation6_spill] sm:$0xff] %v6512_v52  ;;  %v456_v53 = vcombine.high %v454_v32, %v454_v32  ;;  %7503 = vst [vmem:[#allocation7_spill] sm:$0xff] %v6520_v59  ;;  %v6096_v50 = vld [vmem:[%s7475_s4 + $0xbc] ss:$0 sps:$4 sm:$0x11]  }
  0xed   : > { %v6470_v27 = vrot.slane %v955_v24, %v6314_v34  ;;  %v6540_v1 = vsel %vm533_vm1, %v6089_v60, 0  ;;  %v6543_v2 = vsel %vm533_vm1, %v6090_v0, 0  ;;  %v6567_v24 = vsel %vm533_vm1, %v6092_v20, 0 }
  0xee   : > { %v6517_v58 = vrot.slane %v1079_v49, %v6314_v34  ;;  %v484_v63 = vrot.slane %v456_v53, %v6302_v29  ;;  %7504 = vst [vmem:[#allocation8_spill] sm:$0xff] %v6540_v1  ;;  %7505 = vst [vmem:[#allocation9_spill] sm:$0xff] %v6543_v2  ;;  %v486_v32 = vcombine.high %v470_v36, %v470_v36  ;;  %v6589_v41 = vsel %vm533_vm1, %v6094_v35, 0  ;;  %v6095_v36 = vld [vmem:[%s7475_s4 + $0xb0] ss:$0 sps:$4 sm:$0x11]  }
  0xef   : > { %7507 = vst [vmem:[#allocation11_spill] sm:$0xff] %v6567_v24  ;;  %7509 = vst [vmem:[#allocation13_spill] sm:$0xff] %v6589_v41  ;;  %v6605_v60 = vsel %vm533_vm1, %v6095_v36, 0  ;;  %v433_v35 = vmul.f32 0.25, %v6291_v16 }
  0xf0   : > { %v514_v3 = vunpack.i.h.s16 %v484_v63  ;;  %v5072_v10 = vpack.i.b16 %v484_v63, %v484_v63  ;;  %v516_v45 = vunpack.i.h.s16 %v486_v32  ;;  %v5079_v46 = vpack.i.b16 %v486_v32, %v486_v32  ;;  %7510 = vst [vmem:[#allocation14_spill] sm:$0xff] %v6605_v60 }
  0xf1   : > { %5472 = vmatpush3.bf16.xpose.msra.mxu1 %v6351_v47 }
  0xf2   : > { %5485 = vmatprep.subr.bf16.mxu1 %v7486_v8  ;;  %v1203_v14 = vpack.i.b16 %v514_v3, %v514_v3  ;;  %v6556_v21 = vrot.slane %v5072_v10, %v6314_v34  ;;  %v1327_v49 = vpack.i.b16 %v516_v45, %v516_v45  ;;  %v6602_v53 = vrot.slane %v5079_v46, %v6314_v34  ;;  %v6097_v10 = vld [vmem:[%s7475_s4 + $0xa8] sm:$0xff]  }
  0xf3   : > { %5480 = vmatpush3.bf16.xpose.msra.mxu0 %v6354_v48  ;;  %v6613_v3 = vsel %vm533_vm1, %v6096_v50, 0  ;;  %v6632_v20 = vsel %vm533_vm1, %v6097_v10, 0  ;;  %v6099_v46 = vld [vmem:[%s7475_s4 + $0xc8] ss:$0 sps:$4 sm:$0x11]  }
  0xf4   : > { %5493 = vmatprep.subr.bf16.mxu0 %v7486_v8  ;;  %v6564_v23 = vrot.slane %v1203_v14, %v6314_v34  ;;  %v6610_v0 = vrot.slane %v1327_v49, %v6314_v34  ;;  %7511 = vst [vmem:[#allocation15_spill] sm:$0xff] %v6613_v3  ;;  %v488_v14 = vcombine.high %v484_v63, %v484_v63  ;;  %7512 = vst [vmem:[#allocation16_spill] sm:$0xff] %v6632_v20 }
  0xf5   : > { %v6645_v49 = vpack.c.bf16 %v433_v35, %v433_v35  ;;  %v6651_v16 = vsel %vm533_vm1, %v6099_v46, 0 }
  0xf6   : > { %v518_v32 = vunpack.i.h.s16 %v488_v14  ;;  %v5086_v45 = vpack.i.b16 %v488_v14, %v488_v14  ;;  %7514 = vst [vmem:[#allocation18_spill] sm:$0xff] %v6651_v16 }
  0xf7   : > { %v495_v12 = vrot.slane %v6645_v49, %v6302_v29 }
  0xf8   : > { %5474 = vmatmul.mubr.msk.bf16.vlgmr.msra.gmra.mxu1 %vm533_vm1, %v6367_v54  ;;  %v1451_v63 = vpack.i.b16 %v518_v32, %v518_v32  ;;  %v6648_v50 = vrot.slane %v5086_v45, %v6314_v34  ;;  %v6100_v32 = vld [vmem:[%s7475_s4 + $0xc0] sm:$0xff]  }
  0xf9   : > { %5486 = vmatpush3.bf16.xpose.msra.mxu1 %v6370_v55  ;;  %5489 = vmatprep.mubr.msk.bf16.mxu1 %vm6185_vm2, %v7486_v8  ;;  %v502_v45 = vrot.slane %v495_v12, %v6302_v29  ;;  %v6675_v46 = vsel %vm533_vm1, %v6100_v32, 0 }
  0xfa   : > { %5482 = vmatmul.mubr.msk.bf16.vlgmr.msra.gmra.mxu0 %vm533_vm1, %v6375_v56  ;;  %5487 = vmatprep.subr.bf16.mxu1 %v7486_v8  ;;  %v6656_v10 = vrot.slane %v1451_v63, %v6314_v34  ;;  %7515 = vst [vmem:[#allocation19_spill] sm:$0xff] %v6675_v46 }
  0xfb   : > { %5494 = vmatpush3.bf16.xpose.msra.mxu0 %v6378_v57  ;;  %5497 = vmatprep.mubr.msk.bf16.mxu0 %vm6185_vm2, %v7486_v8 }
  0xfc   : > { %5495 = vmatprep.subr.bf16.mxu0 %v7486_v8 }
 0x101   : > { %5488 = vmatpush3.bf16.xpose.msra.mxu1 %v6397_v61 }
 0x102   : > { %5501 = vmatprep.subr.bf16.mxu1 %v7486_v8 }
 0x103   : > { %5496 = vmatpush3.bf16.xpose.msra.mxu0 %v6400_v62 }
 0x104   : > { %5509 = vmatprep.subr.bf16.mxu0 %v7486_v8 }
 0x108   : > { %5490 = vmatmul.mubr.msk.bf16.vlgmr.msra.gmra.mxu1 %vm533_vm1, %v6413_v4 }
 0x109   : > { %5502 = vmatpush3.bf16.xpose.msra.mxu1 %v6416_v5  ;;  %5505 = vmatprep.mubr.msk.bf16.mxu1 %vm6185_vm2, %v7486_v8 }
 0x10a   : > { %5498 = vmatmul.mubr.msk.bf16.vlgmr.msra.gmra.mxu0 %vm533_vm1, %v6421_v6  ;;  %5503 = vmatprep.subr.bf16.mxu1 %v7486_v8 }
 0x10b   : > { %5510 = vmatpush3.bf16.xpose.msra.mxu0 %v6424_v7  ;;  %5513 = vmatprep.mubr.msk.bf16.mxu0 %vm6185_vm2, %v7486_v8 }
 0x10c   : > { %5511 = vmatprep.subr.bf16.mxu0 %v7486_v8 }
 0x111   : > { %5504 = vmatpush3.bf16.xpose.msra.mxu1 %v6443_v18 }
 0x112   : > { %5517 = vmatprep.subr.bf16.mxu1 %v7486_v8 }
 0x113   : > { %5512 = vmatpush3.bf16.xpose.msra.mxu0 %v6446_v19 }
 0x114   : > { %5525 = vmatprep.subr.bf16.mxu0 %v7486_v8 }
 0x118   : > { %5506 = vmatmul.mubr.msk.bf16.vlgmr.msra.gmra.mxu1 %vm533_vm1, %v6461_v26 }
 0x119   : > { %5518 = vmatpush3.bf16.xpose.msra.mxu1 %v6464_v31  ;;  %5521 = vmatprep.mubr.msk.bf16.mxu1 %vm6185_vm2, %v7486_v8 }
 0x11a   : > { %5514 = vmatmul.mubr.msk.bf16.vlgmr.msra.gmra.mxu0 %vm533_vm1, %v6470_v27  ;;  %5519 = vmatprep.subr.bf16.mxu1 %v7486_v8 }
 0x11b   : > { %5526 = vmatpush3.bf16.xpose.msra.mxu0 %v6473_v33  ;;  %5529 = vmatprep.mubr.msk.bf16.mxu0 %vm6185_vm2, %v7486_v8 }
 0x11c   : > { %5527 = vmatprep.subr.bf16.mxu0 %v7486_v8 }
 0x121   : > { %5520 = vmatpush3.bf16.xpose.msra.mxu1 %v6493_v40 }
 0x122   : > { %5533 = vmatprep.subr.bf16.mxu1 %v7486_v8 }
 0x123   : > { %5528 = vmatpush3.bf16.xpose.msra.mxu0 %v6496_v44 }
 0x124   : > { %5541 = vmatprep.subr.bf16.mxu0 %v7486_v8 }
 0x128   : > { %5522 = vmatmul.mubr.msk.bf16.vlgmr.msra.gmra.mxu1 %vm533_vm1, %v6509_v51 }
 0x129   : > { %5534 = vmatpush3.bf16.xpose.msra.mxu1 %v6512_v52  ;;  %5537 = vmatprep.mubr.msk.bf16.mxu1 %vm6185_vm2, %v7486_v8 }
 0x12a   : > { %5530 = vmatmul.mubr.msk.bf16.vlgmr.msra.gmra.mxu0 %vm533_vm1, %v6517_v58  ;;  %5535 = vmatprep.subr.bf16.mxu1 %v7486_v8 }
 0x12b   : > { %5542 = vmatpush3.bf16.xpose.msra.mxu0 %v6520_v59  ;;  %5545 = vmatprep.mubr.msk.bf16.mxu0 %vm6185_vm2, %v7486_v8 }
 0x12c   : > { %5543 = vmatprep.subr.bf16.mxu0 %v7486_v8 }
 0x131   : > { %5536 = vmatpush3.bf16.xpose.msra.mxu1 %v6540_v1 }
 0x132   : > { %5549 = vmatprep.subr.bf16.mxu1 %v7486_v8 }
 0x133   : > { %5544 = vmatpush3.bf16.xpose.msra.mxu0 %v6543_v2 }
 0x134   : > { %5557 = vmatprep.subr.bf16.mxu0 %v7486_v8 }
 0x138   : > { %5538 = vmatmul.mubr.msk.bf16.vlgmr.msra.gmra.mxu1 %vm533_vm1, %v6556_v21 }
 0x139   : > { %5550 = vmatpush3.bf16.xpose.msra.mxu1 %v6559_v22  ;;  %5553 = vmatprep.mubr.msk.bf16.mxu1 %vm6185_vm2, %v7486_v8 }
 0x13a   : > { %5546 = vmatmul.mubr.msk.bf16.vlgmr.msra.gmra.mxu0 %vm533_vm1, %v6564_v23  ;;  %5551 = vmatprep.subr.bf16.mxu1 %v7486_v8 }
 0x13b   : > { %5558 = vmatpush3.bf16.xpose.msra.mxu0 %v6567_v24  ;;  %5561 = vmatprep.mubr.msk.bf16.mxu0 %vm6185_vm2, %v7486_v8 }
 0x13c   : > { %5559 = vmatprep.subr.bf16.mxu0 %v7486_v8 }
 0x141   : > { %5552 = vmatpush3.bf16.xpose.msra.mxu1 %v6586_v37 }
 0x142   : > { %5565 = vmatprep.subr.bf16.mxu1 %v7486_v8 }
 0x143   : > { %5560 = vmatpush3.bf16.xpose.msra.mxu0 %v6589_v41 }
 0x144   : > { %5573 = vmatprep.subr.bf16.mxu0 %v7486_v8 }
 0x148   : > { %5554 = vmatmul.mubr.msk.bf16.vlgmr.msra.gmra.mxu1 %vm533_vm1, %v6602_v53 }
 0x149   : > { %5566 = vmatpush3.bf16.xpose.msra.mxu1 %v6605_v60  ;;  %5569 = vmatprep.mubr.msk.bf16.mxu1 %vm6185_vm2, %v7486_v8 }
 0x14a   : > { %5562 = vmatmul.mubr.msk.bf16.vlgmr.msra.gmra.mxu0 %vm533_vm1, %v6610_v0  ;;  %5567 = vmatprep.subr.bf16.mxu1 %v7486_v8  ;;  %v1580_v36 = vpop.permute.xlu0 %1579 }
 0x14b   : > { %5574 = vmatpush3.bf16.xpose.msra.mxu0 %v6613_v3  ;;  %5577 = vmatprep.mubr.msk.bf16.mxu0 %vm6185_vm2, %v7486_v8  ;;  %v1646_v14 = vsel %vm533_vm1, %v1580_v36, 0 }
 0x14c   : > { %5575 = vmatprep.subr.bf16.mxu0 %v7486_v8 }
 0x150   : > { %v1578_v35 = vpop.permute.xlu0 %1577 }
 0x151   : > { %5568 = vmatpush3.bf16.xpose.msra.mxu1 %v6632_v20  ;;  %v1643_v63 = vsel %vm533_vm1, %v1578_v35, 0 }
 0x152   : > { %5581 = vmatprep.subr.bf16.mxu1 %v7486_v8 }
 0x153   : > { %5576 = vmatpush3.bf16.xpose.msra.mxu0 %v6635_v25 }
 0x154   : > { %6037 = vmatprep.subr.msk.bf16.mxu0 %vm533_vm1, %v1580_v36  ;;  %v5093_v36 = vpack.i.b16 %v502_v45, %v502_v45 }
 0x158   : > { %5570 = vmatmul.mubr.msk.bf16.vlgmr.msra.gmra.mxu1 %vm533_vm1, %v6648_v50 }
 0x159   : > { %5582 = vmatpush3.bf16.xpose.msra.mxu1 %v6651_v16  ;;  %5585 = vmatprep.mubr.msk.bf16.mxu1 %vm6185_vm2, %v7486_v8 }
 0x15a   : > { %5578 = vmatmul.mubr.msk.bf16.vlgmr.msra.gmra.mxu0 %vm533_vm1, %v6656_v10  ;;  %5583 = vmatprep.subr.bf16.mxu1 %v7486_v8 }
 0x15b   : > { %5590 = vmatpush3.bf16.xpose.msra.mxu0 %v1646_v14  ;;  %5593 = vmatprep.mubr.msk.bf16.mxu0 %vm533_vm1, %v6305_v30  ;;  %v6682_v14 = vrot.slane %v5093_v36, %v6314_v34 }
 0x15c   : > { %6038 = vmatprep.subr.msk.bf16.mxu0 %vm533_vm1, %v1578_v35 }
 0x161   : > { %5584 = vmatpush3.bf16.xpose.msra.mxu1 %v6675_v46 }
 0x162   : > { %5597 = vmatprep.subr.bf16.mxu1 %v7486_v8 }
 0x163   : > { %5592 = vmatpush3.bf16.xpose.msra.mxu0 %v1643_v63 }
 0x164   : > { %5605 = vmatprep.subr.bf16.mxu0 %v7486_v8 }
 0x168   : > { %5586 = vmatmul.mubr.msk.bf16.vlgmr.msra.gmra.mxu1 %vm533_vm1, %v6682_v14 }
 0x169   : > { %5601 = vmatprep.mubr.msk.bf16.mxu1 %vm6185_vm2, %v7486_v8 }
 0x16a   : > { %5594 = vmatmul.mubr.msk.bf16.vlgmr.msra.gmra.mxu0 %vm533_vm1, %v6645_v49 }
 0x16b   : > { %5609 = vmatprep.mubr.msk.bf16.mxu0 %vm6185_vm2, %v7486_v8 }
 0x1a8   : > { %v577_v12 = vpop.f32.mrf.mxu1 }
 0x1aa   : > { %v5459_v32 = vpop.f32.mrf.mxu1  ;;  %v639_v35 = vpop.f32.mrf.mxu0 }
 0x1ab   : > { %v1598_v45 = vrot.slane %v639_v35, 7 }
 0x1ac   : > { %v580_v63 = vpop.f32.mrf.mxu1  ;;  %v5467_v36 = vpop.f32.mrf.mxu0 }
 0x1ad   : > { %v1600_v46 = vsel %vm1599_vm3, %v1598_v45, %v577_v12 }
 0x1ae   : > { %v5460_v16 = vpop.f32.mrf.mxu1  ;;  %v642_v25 = vpop.f32.mrf.mxu0 }
 0x1b0   : > { %v5468_v20 = vpop.f32.mrf.mxu0 }
 0x1b8   : > { %v701_v3 = vpop.f32.mrf.mxu1 }
 0x1b9   : > { %v1601_v60 = vrot.slane %v701_v3, 6 }
 0x1ba   : > { %v5475_v41 = vpop.f32.mrf.mxu1  ;;  %v763_v37 = vpop.f32.mrf.mxu0 }
 0x1bb   : > { %v1603_v8 = vsel %vm1602_vm4, %v1601_v60, %v1600_v46  ;;  %v1604_v24 = vrot.slane %v763_v37, 5 }
 0x1bc   : > { %v704_v32 = vpop.f32.mrf.mxu1  ;;  %v5483_v22 = vpop.f32.mrf.mxu0 }
 0x1bd   : > { %v1606_v35 = vsel %vm1605_vm5, %v1604_v24, %v1603_v8 }
 0x1be   : > { %v5476_v63 = vpop.f32.mrf.mxu1  ;;  %v766_v36 = vpop.f32.mrf.mxu0 }
 0x1c0   : > { %v5484_v2 = vpop.f32.mrf.mxu0 }
 0x1c8   : > { %v825_v12 = vpop.f32.mrf.mxu1 }
 0x1c9   : > { %v1607_v25 = vrot.slane %v825_v12, 4 }
 0x1ca   : > { %v5491_v20 = vpop.f32.mrf.mxu1  ;;  %v887_v16 = vpop.f32.mrf.mxu0 }
 0x1cb   : > { %v1609_v41 = vsel %vm1608_vm6, %v1607_v25, %v1606_v35  ;;  %v1610_v3 = vrot.slane %v887_v16, 3 }
 0x1cc   : > { %v828_v45 = vpop.f32.mrf.mxu1  ;;  %v5499_v1 = vpop.f32.mrf.mxu0 }
 0x1cd   : > { %v1612_v37 = vsel %vm1611_vm7, %v1610_v3, %v1609_v41 }
 0x1ce   : > { %v5492_v60 = vpop.f32.mrf.mxu1  ;;  %v890_v22 = vpop.f32.mrf.mxu0 }
 0x1d0   : > { %v5500_v46 = vpop.f32.mrf.mxu0 }
 0x1d8   : > { %v949_v8 = vpop.f32.mrf.mxu1 }
 0x1d9   : > { %v1613_v24 = vrot.slane %v949_v8, 2 }
 0x1da   : > { %v5507_v2 = vpop.f32.mrf.mxu1  ;;  %v1011_v32 = vpop.f32.mrf.mxu0 }
 0x1db   : > { %v1616_v63 = vrot.slane %v1011_v32, 1  ;;  %v1615_v36 = vsel %vm1614_vm8, %v1613_v24, %v1612_v37 }
 0x1dc   : > { %v952_v12 = vpop.f32.mrf.mxu1  ;;  %v5515_v20 = vpop.f32.mrf.mxu0 }
 0x1dd   : > { %v1618_v35 = vsel %vm1617_vm9, %v1616_v63, %v1615_v36 }
 0x1de   : > { %v5508_v25 = vpop.f32.mrf.mxu1  ;;  %v1014_v1 = vpop.f32.mrf.mxu0 }
 0x1e0   : > { %v5516_v16 = vpop.f32.mrf.mxu0 }
 0x1e8   : > { %v1073_v41 = vpop.f32.mrf.mxu1 }
 0x1ea   : > { %v5523_v3 = vpop.f32.mrf.mxu1  ;;  %v1135_v45 = vpop.f32.mrf.mxu0 }
 0x1ec   : > { %v1076_v60 = vpop.f32.mrf.mxu1  ;;  %v5531_v22 = vpop.f32.mrf.mxu0 }
 0x1ee   : > { %v5524_v46 = vpop.f32.mrf.mxu1  ;;  %v1138_v8 = vpop.f32.mrf.mxu0 }
 0x1f0   : > { %v5532_v2 = vpop.f32.mrf.mxu0 }
 0x1f8   : > { %v1197_v59 = vpop.f32.mrf.mxu1 }
 0x1fa   : > { %v5539_v52 = vpop.f32.mrf.mxu1  ;;  %v1259_v32 = vpop.f32.mrf.mxu0 }
 0x1fc   : > { %v1200_v44 = vpop.f32.mrf.mxu1  ;;  %v5547_v37 = vpop.f32.mrf.mxu0 }
 0x1fd   : > { %v1619_v44 = vrot.slane %v1135_v45, 7 }
 0x1fe   : > { %v5540_v24 = vpop.f32.mrf.mxu1  ;;  %v1262_v12 = vpop.f32.mrf.mxu0 }
 0x1ff   : > { %v1621_v24 = vrot.slane %v1197_v59, 6  ;;  %v1620_v12 = vsel %vm1599_vm3, %v1619_v44, %v1073_v41 }
 0x200   : > { %v5548_v20 = vpop.f32.mrf.mxu0 }
 0x201   : > { %v1623_v20 = vrot.slane %v1259_v32, 5 }
 0x208   : > { %v1321_v63 = vpop.f32.mrf.mxu1 }
 0x20a   : > { %v5555_v36 = vpop.f32.mrf.mxu1  ;;  %v1383_v25 = vpop.f32.mrf.mxu0 }
 0x20b   : > { %v1622_v36 = vsel %vm1602_vm4, %v1621_v24, %v1620_v12 }
 0x20c   : > { %v1324_v1 = vpop.f32.mrf.mxu1  ;;  %v5563_v16 = vpop.f32.mrf.mxu0 }
 0x20d   : > { %v1625_v1 = vrot.slane %v1321_v63, 4  ;;  %v1624_v16 = vsel %vm1605_vm5, %v1623_v20, %v1622_v36 }
 0x20e   : > { %v5556_v3 = vpop.f32.mrf.mxu1  ;;  %v1386_v40 = vpop.f32.mrf.mxu0 }
 0x20f   : > { %v1627_v40 = vrot.slane %v1383_v25, 3 }
 0x210   : > { %v5564_v60 = vpop.f32.mrf.mxu0 }
 0x211   : > { %v1626_v60 = vsel %vm1608_vm6, %v1625_v1, %v1624_v16 }
 0x212   : > { %v1628_v45 = vsel %vm1611_vm7, %v1627_v40, %v1626_v60 }
 0x218   : > { %v1445_v22 = vpop.f32.mrf.mxu1 }
 0x21a   : > { %v5571_v46 = vpop.f32.mrf.mxu1  ;;  %v1507_v8 = vpop.f32.mrf.mxu0 }
 0x21b   : > { %v1629_v46 = vrot.slane %v1445_v22, 2  ;;  %v1631_v59 = vrot.slane %v1507_v8, 1 }
 0x21c   : > { %v1448_v2 = vpop.f32.mrf.mxu1  ;;  %v5579_v33 = vpop.f32.mrf.mxu0 }
 0x21d   : > { %v1630_v44 = vsel %vm1614_vm8, %v1629_v46, %v1628_v45  ;;  %v6101_v46 = vld [vmem:[%s7476_s5 + $0x8] ss:$0 sps:$4 sm:$0x11]  }
 0x21e   : > { %v5572_v52 = vpop.f32.mrf.mxu1  ;;  %v1510_v31 = vpop.f32.mrf.mxu0  ;;  %v1632_v24 = vsel %vm1617_vm9, %v1631_v59, %v1630_v44 }
 0x220   : > { %v5580_v37 = vpop.f32.mrf.mxu0 }
 0x228   : > { %v1569_v3 = vpop.f32.mrf.mxu1 }
 0x22a   : > { %v5587_v2 = vpop.f32.mrf.mxu1  ;;  %v5595_v33 = vpop.f32.mrf.mxu0 }
 0x22b   : > { %v1691_v31 = vadd.f32 %v5595_v33, %v1569_v3  ;;  %v6191_v2 = vmov 0  }
 0x22c   : > { %v1572_v52 = vpop.f32.mrf.mxu1  ;;  %v1682_v41 = vpop.f32.mrf.mxu0  ;;  %v6740_v33 = vsel %vm1832_vm12, 65535, %v6191_v2 }
 0x22d   : > { %v1683_v32 = vadd.f32 %v1682_v41, %v1618_v35  ;;  %v1704_v63 = vsel %vm1703_vm10, %v1691_v31, -inf  ;;  %v6746_v45 = vand.u32 %v6101_v46, %v6740_v33  ;;  %v7516_v52 = vmov 0.0   ;;  %v6764_v41 = vld [vmem:[%s7476_s5 + $0xc] sm:$0xff]  }
 0x22e   : > { %v5588_v25 = vpop.f32.mrf.mxu1  ;;  %1705 = vmax.xlane.f32.xlu0 %v1704_v63  ;;  %v5596_v37 = vpop.f32.mrf.mxu0  ;;  %v6106_v63 = vld [vmem:[%s7476_s5 + $0x2c] ss:$0 sps:$4 sm:$0x11]   ;;  %v6113_v46 = vld [vmem:[%s7476_s5 + $0x50] ss:$0 sps:$4 sm:$0x11]  }
 0x22f   : > { %v1697_v22 = vsel %vm1696_vm11, %v1683_v32, -inf  ;;  %5598 = vmatpush3.bf16.msra.mxu1 %v6746_v45 }
 0x230   : > { %v1685_v12 = vpop.f32.mrf.mxu0  ;;  %1698 = vmax.xlane.f32.xlu1 %v1697_v22  ;;  %5599 = vmatprep.subr.bf16.mxu1 %v7516_v52 }
 0x231   : > { %v1686_v20 = vadd.f32 %v1685_v12, %v1632_v24 }
 0x233   : > { %v1700_v8 = vsel %vm1696_vm11, %v1686_v20, -inf }
 0x234   : > { %1701 = vmax.xlane.f32.xlu1 %v1700_v8 }
 0x244   : > { %2993 = vrot.lane.b32.xlu0 %v6328_v42, %s6188_s13 }
 0x248   : > { %3128 = vrot.lane.b32.xlu0 %v6413_v4, %s6188_s13 }
 0x24c   : > { %3218 = vrot.lane.b32.xlu0 %v6461_v26, %s6188_s13 }
 0x250   : > { %3308 = vrot.lane.b32.xlu0 %v6509_v51, %s6188_s13 }
 0x254   : > { %3398 = vrot.lane.b32.xlu0 %v6556_v21, %s6188_s13 }
 0x258   : > { %3623 = vrot.lane.b32.xlu0 %v6656_v10, %s6188_s13 }
 0x25c   : > { %3717 = vrot.lane.b32.xlu0 %v6300_v28, %s6189_s14 }
 0x260   : > { %3715 = vrot.lane.b32.xlu0 %v6645_v49, %s6188_s13 }
 0x264   : > { %3668 = vrot.lane.b32.xlu0 %v6682_v14, %s6188_s13 }
 0x2b7   : > { %v1706_v42 = vpop.xlane.xlu0 %1705 }
 0x2b8   : > { %v1709_v51 = vsub.f32 %v1691_v31, %v1706_v42  ;;  %v6102_v31 = vld [vmem:[%s7476_s5 + $0x14] ss:$0 sps:$4 sm:$0x11]  }
 0x2b9   : > { %v1699_v4 = vpop.xlane.xlu1 %1698  ;;  %v6749_v59 = vand.u32 %v6102_v31, %v6740_v33  ;;  %v6112_v31 = vld [vmem:[%s7476_s5 + $0x3c] sm:$0xff]  }
 0x2ba   : > { %v1707_v26 = vsub.f32 %v1683_v32, %v1699_v4  ;;  %v1714_v1 = vmul.f32 1.442695, %v1709_v51  ;;  %v6107_v4 = vld [vmem:[%s7476_s5 + $0x18] sm:$0xff]  }
 0x2bb   : > { %5606 = vmatpush3.bf16.msra.mxu0 %v6749_v59 }
 0x2bc   : > { %v1710_v35 = vmul.f32 1.442695, %v1707_v26  ;;  %5607 = vmatprep.subr.bf16.mxu0 %v7516_v52  ;;  %v6109_v26 = vld [vmem:[%s7476_s5 + $0x38] ss:$0 sps:$4 sm:$0x11]  }
 0x2bd   : > { %v1702_v36 = vpop.xlane.xlu1 %1701 }
 0x2be   : > { %6137 = vpow2.f32 %v1710_v35  ;;  %v1708_v21 = vsub.f32 %v1686_v20, %v1702_v36  ;;  %v6811_v20 = vand.u32 %v6106_v63, %v6740_v33  ;;  %v6108_v35 = vld [vmem:[%s7476_s5 + $0x24] sm:$0xff]  }
 0x2bf   : > { %5608 = vmatpush3.bf16.msra.mxu0 %v6764_v41  ;;  %v6110_v36 = vld [vmem:[%s7476_s5 + $0x44] ss:$0 sps:$4 sm:$0x11]   ;;  %v6115_v63 = vld [vmem:[%s7476_s5 + $0x48] sm:$0xff]  }
 0x2c0   : > { %v1712_v10 = vmul.f32 1.442695, %v1708_v21  ;;  %5621 = vmatprep.subr.bf16.mxu0 %v7516_v52 }
 0x2c2   : > { %6139 = vpow2.f32 %v1712_v10  ;;  %v6837_v10 = vand.u32 %v6109_v26, %v6740_v33 }
 0x2c3   : > { %6141 = vpow2.f32 %v1714_v1 }
 0x2cb   : > { %v6138_v16 = vpop.eup %6137 }
 0x2cc   : > { %v1716_v40 = vsel %vm1696_vm11, %v6138_v16, 0.0 }
 0x2cd   : > { %1717 = vadd.xlane.f32.xlu1 %v1716_v40  ;;  %v6842_v40 = vand.u32 %v6110_v36, %v6740_v33 }
 0x2cf   : > { %v6140_v49 = vpop.eup %6139 }
 0x2d0   : > { %v1719_v3 = vsel %vm1696_vm11, %v6140_v49, 0.0  ;;  %v6729_v14 = vpop.eup %6141 }
 0x2d1   : > { %1720 = vadd.xlane.f32.xlu1 %v1719_v3  ;;  %v1722_v60 = vsel %vm1703_vm10, %v6729_v14, 0.0 }
 0x2d5   : > { %1723 = vadd.xlane.f32.xlu1 %v1722_v60  ;;  %v6111_v60 = vld [vmem:[%s7476_s5 + $0x30] sm:$0xff]  }
 0x2e6   : > { %2840 = vrot.lane.b32.xlu1 %v6295_v17, %s6190_s15 }
 0x2ea   : > { %2838 = vrot.lane.b32.xlu1 %v6300_v28, %s6190_s15 }
 0x2ee   : > { %3083 = vrot.lane.b32.xlu1 %v6375_v56, %s6188_s13  ;;  %v6757_v56 = vld [vmem:[%s7476_s5] sm:$0xff]  }
 0x2ef   : > { %5600 = vmatpush3.bf16.msra.mxu1 %v6757_v56 }
 0x2f0   : > { %5613 = vmatprep.subr.bf16.mxu1 %v7516_v52 }
 0x2f2   : > { %2948 = vrot.lane.b32.xlu1 %v6320_v38, %s6188_s13 }
 0x2f6   : > { %3173 = vrot.lane.b32.xlu1 %v6421_v6, %s6188_s13 }
 0x2fa   : > { %3038 = vrot.lane.b32.xlu1 %v6367_v54, %s6188_s13 }
 0x2fe   : > { %3263 = vrot.lane.b32.xlu1 %v6470_v27, %s6188_s13 }
 0x302   : > { %3353 = vrot.lane.b32.xlu1 %v6517_v58, %s6188_s13 }
 0x306   : > { %3443 = vrot.lane.b32.xlu1 %v6564_v23, %s6188_s13 }
 0x30a   : > { %3533 = vrot.lane.b32.xlu1 %v6610_v0, %s6188_s13 }
 0x30e   : > { %3719 = vrot.lane.b32.xlu1 %v6295_v17, %s6189_s14  ;;  %s6193_s14 = smov 16  }
 0x312   : > { %3488 = vrot.lane.b32.xlu1 %v6602_v53, %s6188_s13 }
 0x316   : > { %3713 = vrot.lane.b32.xlu1 %v6305_v30, %s6188_s13  ;;  %v6105_v30 = vld [vmem:[%s7476_s5 + $0x20] ss:$0 sps:$4 sm:$0x11]  }
 0x317   : > { %v6807_v22 = vand.u32 %v6105_v30, %v6740_v33 }
 0x31a   : > { %3578 = vrot.lane.b32.xlu1 %v6648_v50, %s6188_s13 }
 0x356   : > { %v1718_v38 = vpop.xlane.xlu1 %1717 }
 0x357   : > { %6143 = vrcp.f32 %v1718_v38  ;;  %v6114_v38 = vld [vmem:[%s7476_s5 + $0x5c] ss:$0 sps:$4 sm:$0x11]  }
 0x358   : > { %v6876_v30 = vand.u32 %v6114_v38, %v6740_v33 }
 0x35a   : > { %v1721_v54 = vpop.xlane.xlu1 %1720 }
 0x35b   : > { %6145 = vrcp.f32 %v1721_v54 }
 0x35e   : > { %v1724_v26 = vpop.xlane.xlu1 %1723 }
 0x35f   : > { %6147 = vrcp.f32 %v1724_v26 }
 0x364   : > { %v6144_v6 = vpop.eup %6143 }
 0x365   : > { %v1728_v58 = vmul.f32 %v6144_v6, %v6138_v16 }
 0x368   : > { %v6146_v27 = vpop.eup %6145 }
 0x369   : > { %v6791_v23 = vmul.f32 %v6146_v27, %v6140_v49 }
 0x36b   : > { %v6794_v0 = vpack.c.bf16 %v6791_v23, %v1728_v58  ;;  %v5099_v54 = vpack.c.bf16 %v6791_v23, %v6791_v23  ;;  %v6871_v58 = vand.u32 %v6113_v46, %v6740_v33 }
 0x36d   : > { %v1742_v53 = vrot.slane %v6794_v0, %v6302_v29 }
 0x36f   : > { %v1758_v50 = vrot.slane %v1742_v53, %v6302_v29  ;;  %v1750_v32 = vcombine.high %v1742_v53, %v1742_v53 }
 0x371   : > { %v5100_v44 = vpack.i.b16 %v1758_v50, %v1758_v50  ;;  %v1799_v25 = vunpack.i.h.s16 %v1758_v50  ;;  %v1772_v37 = vrot.slane %v1750_v32, %v6302_v29  ;;  %v1780_v1 = vcombine.high %v1758_v50, %v1758_v50 }
 0x372   : > { %v1749_v50 = vrot.slane %v5099_v54, %v6302_v29 }
 0x373   : > { %v1819_v24 = vrot.slane %v5100_v44, %v6314_v34  ;;  %v1878_v12 = vpack.i.b16 %v1799_v25, %v1799_v25  ;;  %v1801_v42 = vunpack.i.h.s16 %v1772_v37  ;;  %v5107_v51 = vpack.i.b16 %v1772_v37, %v1772_v37  ;;  %v6117_v44 = vld [vmem:[%s7476_s5 + $0x68] ss:$0 sps:$4 sm:$0x11]  }
 0x374   : > { %v1803_v3 = vunpack.i.h.s16 %v1780_v1  ;;  %v5114_v2 = vpack.i.b16 %v1780_v1, %v1780_v1  ;;  %v1782_v27 = vcombine.high %v1772_v37, %v1772_v37  ;;  %v6116_v37 = vld [vmem:[%s7476_s5 + $0x54] sm:$0xff]   ;;  %v6119_v1 = vld [vmem:[%s7476_s5 + $0x60] sm:$0xff]  }
 0x375   : > { %5602 = vmatmul.mubr.msk.bf16.vlgmr.msra.gmra.mxu1 %vm1696_vm11, %v1819_v24  ;;  %v1882_v8 = vrot.slane %v1878_v12, %v6314_v34  ;;  %v1998_v21 = vpack.i.b16 %v1801_v42, %v1801_v42  ;;  %v1942_v16 = vrot.slane %v5107_v51, %v6314_v34  ;;  %v6118_v24 = vld [vmem:[%s7476_s5 + $0x74] ss:$0 sps:$4 sm:$0x11]   ;;  %v6905_v42 = vand.u32 %v6117_v44, %v6740_v33 }
 0x376   : > { %5614 = vmatpush3.bf16.msra.mxu1 %v6807_v22  ;;  %5617 = vmatprep.mubr.msk.bf16.mxu1 %vm6185_vm2, %v7516_v52  ;;  %v2118_v6 = vpack.i.b16 %v1803_v3, %v1803_v3  ;;  %v2062_v53 = vrot.slane %v5114_v2, %v6314_v34  ;;  %v1805_v32 = vunpack.i.h.s16 %v1782_v27  ;;  %v5121_v25 = vpack.i.b16 %v1782_v27, %v1782_v27  ;;  %v6120_v3 = vld [vmem:[%s7476_s5 + $0x6c] sm:$0xff]  }
 0x377   : > { %5610 = vmatmul.mubr.msk.bf16.vlgmr.msra.gmra.mxu0 %vm1696_vm11, %v1882_v8  ;;  %5615 = vmatprep.subr.bf16.mxu1 %v7516_v52  ;;  %v2002_v49 = vrot.slane %v1998_v21, %v6314_v34  ;;  %v1765_v8 = vrot.slane %v1749_v50, %v6302_v29  ;;  %v6910_v51 = vand.u32 %v6118_v24, %v6740_v33 }
 0x378   : > { %5622 = vmatpush3.bf16.msra.mxu0 %v6811_v20  ;;  %5625 = vmatprep.mubr.msk.bf16.mxu0 %vm6185_vm2, %v7516_v52  ;;  %v2122_v23 = vrot.slane %v2118_v6, %v6314_v34  ;;  %v2238_v12 = vpack.i.b16 %v1805_v32, %v1805_v32  ;;  %v1751_v21 = vcombine.high %v1749_v50, %v1749_v50  ;;  %v6125_v50 = vld [vmem:[%s7476_s5 + $0x98] ss:$0 sps:$4 sm:$0x11]   ;;  %v6124_v32 = vld [vmem:[%s7476_s5 + $0x84] sm:$0xff]  }
 0x379   : > { %5623 = vmatprep.subr.bf16.mxu0 %v7516_v52  ;;  %v1807_v36 = vunpack.i.h.s16 %v1765_v8 }
 0x37a   : > { %5616 = vmatpush3.bf16.msra.mxu1 %v6107_v4  ;;  %v2182_v4 = vrot.slane %v5121_v25, %v6314_v34  ;;  %v1779_v2 = vrot.slane %v1751_v21, %v6302_v29  ;;  %v1781_v25 = vcombine.high %v1765_v8, %v1765_v8 }
 0x37b   : > { %5629 = vmatprep.subr.bf16.mxu1 %v7516_v52  ;;  %v2358_v46 = vpack.i.b16 %v1807_v36, %v1807_v36  ;;  %v6129_v36 = vld [vmem:[%s7476_s5 + $0xb0] ss:$0 sps:$4 sm:$0x11]  }
 0x37c   : > { %5624 = vmatpush3.bf16.msra.mxu0 %v6108_v35  ;;  %v2242_v35 = vrot.slane %v2238_v12, %v6314_v34  ;;  %v1809_v27 = vunpack.i.h.s16 %v1779_v2  ;;  %v6148_v12 = vpop.eup %6147 }
 0x37d   : > { %5618 = vmatmul.mubr.msk.bf16.vlgmr.msra.gmra.mxu1 %vm1696_vm11, %v1942_v16  ;;  %5637 = vmatprep.subr.bf16.mxu0 %v7516_v52  ;;  %v6121_v16 = vld [vmem:[%s7476_s5 + $0x80] ss:$0 sps:$4 sm:$0x11]   ;;  %v2362_v6 = vrot.slane %v2358_v46, %v6314_v34  ;;  %v1730_v21 = vmul.f32 %v6148_v12, %v6729_v14 }
 0x37e   : > { %5630 = vmatpush3.bf16.msra.mxu1 %v6837_v10  ;;  %5633 = vmatprep.mubr.msk.bf16.mxu1 %vm6185_vm2, %v7516_v52  ;;  %v2478_v44 = vpack.i.b16 %v1809_v27, %v1809_v27 }
 0x37f   : > { %5626 = vmatmul.mubr.msk.bf16.vlgmr.msra.gmra.mxu0 %vm1696_vm11, %v2002_v49  ;;  %5631 = vmatprep.subr.bf16.mxu1 %v7516_v52  ;;  %v5128_v49 = vpack.i.b16 %v1765_v8, %v1765_v8  ;;  %v1811_v8 = vunpack.i.h.s16 %v1781_v25  ;;  %v1732_v46 = vpack.c.bf16 %v1730_v21, %v1730_v21 }
 0x380   : > { %5638 = vmatpush3.bf16.msra.mxu0 %v6842_v40  ;;  %5641 = vmatprep.mubr.msk.bf16.mxu0 %vm6185_vm2, %v7516_v52  ;;  %v2482_v26 = vrot.slane %v2478_v44, %v6314_v34  ;;  %v6132_v44 = vld [vmem:[%s7476_s5 + $0xb4] sm:$0xff]  }
 0x381   : > { %5639 = vmatprep.subr.bf16.mxu0 %v7516_v52  ;;  %v2302_v38 = vrot.slane %v5128_v49, %v6314_v34  ;;  %v6130_v49 = vld [vmem:[%s7476_s5 + $0xbc] ss:$0 sps:$4 sm:$0x11]   ;;  %v2598_v14 = vpack.i.b16 %v1811_v8, %v1811_v8 }
 0x382   : > { %5632 = vmatpush3.bf16.msra.mxu1 %v6111_v60  ;;  %v6122_v60 = vld [vmem:[%s7476_s5 + $0x8c] ss:$0 sps:$4 sm:$0x11]  }
 0x383   : > { %5645 = vmatprep.subr.bf16.mxu1 %v7516_v52  ;;  %v6943_v54 = vand.u32 %v6122_v60, %v6740_v33  ;;  %v7003_v60 = vand.u32 %v6129_v36, %v6740_v33  ;;  %v2602_v27 = vrot.slane %v2598_v14, %v6314_v34  ;;  %v6134_v36 = vld [vmem:[%s7476_s5 + $0xc0] sm:$0xff]  }
 0x384   : > { %5640 = vmatpush3.bf16.msra.mxu0 %v6112_v31  ;;  %v6938_v31 = vand.u32 %v6121_v16, %v6740_v33  ;;  %v6128_v16 = vld [vmem:[%s7476_s5 + $0x9c] sm:$0xff]  }
 0x385   : > { %5634 = vmatmul.mubr.msk.bf16.vlgmr.msra.gmra.mxu1 %vm1696_vm11, %v2062_v53  ;;  %5653 = vmatprep.subr.bf16.mxu0 %v7516_v52  ;;  %v6123_v53 = vld [vmem:[%s7476_s5 + $0x78] sm:$0xff]  }
 0x386   : > { %5646 = vmatpush3.bf16.msra.mxu1 %v6871_v58  ;;  %5649 = vmatprep.mubr.msk.bf16.mxu1 %vm6185_vm2, %v7516_v52 }
 0x387   : > { %5642 = vmatmul.mubr.msk.bf16.vlgmr.msra.gmra.mxu0 %vm1696_vm11, %v2122_v23  ;;  %5647 = vmatprep.subr.bf16.mxu1 %v7516_v52  ;;  %v5135_v23 = vpack.i.b16 %v1779_v2, %v1779_v2 }
 0x388   : > { %5654 = vmatpush3.bf16.msra.mxu0 %v6876_v30  ;;  %5657 = vmatprep.mubr.msk.bf16.mxu0 %vm6185_vm2, %v7516_v52 }
 0x389   : > { %5655 = vmatprep.subr.bf16.mxu0 %v7516_v52  ;;  %v2422_v24 = vrot.slane %v5135_v23, %v6314_v34 }
 0x38a   : > { %5648 = vmatpush3.bf16.msra.mxu1 %v6115_v63  ;;  %v6126_v63 = vld [vmem:[%s7476_s5 + $0xa4] ss:$0 sps:$4 sm:$0x11]  }
 0x38b   : > { %5661 = vmatprep.subr.bf16.mxu1 %v7516_v52 }
 0x38c   : > { %5656 = vmatpush3.bf16.msra.mxu0 %v6116_v37  ;;  %v6970_v37 = vand.u32 %v6125_v50, %v6740_v33  ;;  %v6133_v50 = vld [vmem:[%s7476_s5 + $0xc8] ss:$0 sps:$4 sm:$0x11]  }
 0x38d   : > { %5650 = vmatmul.mubr.msk.bf16.vlgmr.msra.gmra.mxu1 %vm1696_vm11, %v2182_v4  ;;  %5669 = vmatprep.subr.bf16.mxu0 %v7516_v52  ;;  %v6975_v4 = vand.u32 %v6126_v63, %v6740_v33  ;;  %v2841_v63 = vpop.permute.xlu1 %2840 }
 0x38e   : > { %5662 = vmatpush3.bf16.msra.mxu1 %v6905_v42  ;;  %5665 = vmatprep.mubr.msk.bf16.mxu1 %vm6185_vm2, %v7516_v52  ;;  %v2898_v12 = vand.u32 %v2841_v63, %v6740_v33  ;;  %v7530_v63 = vld [vmem:[#allocation15_spill] sm:$0xff] }
 0x38f   : > { %5658 = vmatmul.mubr.msk.bf16.vlgmr.msra.gmra.mxu0 %vm1696_vm11, %v2242_v35  ;;  %5663 = vmatprep.subr.bf16.mxu1 %v7516_v52  ;;  %v6127_v35 = vld [vmem:[%s7476_s5 + $0x90] sm:$0xff]  }
 0x390   : > { %5670 = vmatpush3.bf16.msra.mxu0 %v6910_v51  ;;  %5673 = vmatprep.mubr.msk.bf16.mxu0 %vm6185_vm2, %v7516_v52 }
 0x391   : > { %5671 = vmatprep.subr.bf16.mxu0 %v7516_v52 }
 0x392   : > { %5664 = vmatpush3.bf16.msra.mxu1 %v6119_v1  ;;  %v5142_v1 = vpack.i.b16 %v1781_v25, %v1781_v25 }
 0x393   : > { %5677 = vmatprep.subr.bf16.mxu1 %v7516_v52 }
 0x394   : > { %5672 = vmatpush3.bf16.msra.mxu0 %v6120_v3  ;;  %v1783_v3 = vcombine.high %v1779_v2, %v1779_v2 }
 0x395   : > { %5666 = vmatmul.mubr.msk.bf16.vlgmr.msra.gmra.mxu1 %vm1696_vm11, %v2302_v38  ;;  %5685 = vmatprep.subr.bf16.mxu0 %v7516_v52  ;;  %v2542_v38 = vrot.slane %v5142_v1, %v6314_v34  ;;  %v2839_v1 = vpop.permute.xlu1 %2838 }
 0x396   : > { %5678 = vmatpush3.bf16.msra.mxu1 %v6938_v31  ;;  %5681 = vmatprep.mubr.msk.bf16.mxu1 %vm6185_vm2, %v7516_v52  ;;  %v1813_v2 = vunpack.i.h.s16 %v1783_v3  ;;  %v5149_v23 = vpack.i.b16 %v1783_v3, %v1783_v3 }
 0x397   : > { %5674 = vmatmul.mubr.msk.bf16.vlgmr.msra.gmra.mxu0 %vm1696_vm11, %v2362_v6  ;;  %5679 = vmatprep.subr.bf16.mxu1 %v7516_v52  ;;  %v7008_v6 = vand.u32 %v6130_v49, %v6740_v33  ;;  %v2994_v49 = vpop.permute.xlu0 %2993 }
 0x398   : > { %5686 = vmatpush3.bf16.msra.mxu0 %v6943_v54  ;;  %5689 = vmatprep.mubr.msk.bf16.mxu0 %vm6185_vm2, %v7516_v52  ;;  %v2718_v25 = vpack.i.b16 %v1813_v2, %v1813_v2 }
 0x399   : > { %5687 = vmatprep.subr.bf16.mxu0 %v7516_v52 }
 0x39a   : > { %5680 = vmatpush3.bf16.msra.mxu1 %v6123_v53  ;;  %v6131_v53 = vld [vmem:[%s7476_s5 + $0xa8] sm:$0xff]  }
 0x39b   : > { %5693 = vmatprep.subr.bf16.mxu1 %v7516_v52 }
 0x39c   : > { %5688 = vmatpush3.bf16.msra.mxu0 %v6124_v32  ;;  %v1790_v32 = vrot.slane %v1732_v46, %v6302_v29 }
 0x39d   : > { %5682 = vmatmul.mubr.msk.bf16.vlgmr.msra.gmra.mxu1 %vm1696_vm11, %v2422_v24  ;;  %5701 = vmatprep.subr.bf16.mxu0 %v7516_v52  ;;  %v7033_v24 = vand.u32 %v6133_v50, %v6740_v33  ;;  %v7528_v50 = vld [vmem:[#allocation13_spill] sm:$0xff] }
 0x39e   : > { %5694 = vmatpush3.bf16.msra.mxu1 %v6970_v37  ;;  %5697 = vmatprep.mubr.msk.bf16.mxu1 %vm6185_vm2, %v7516_v52  ;;  %v1797_v8 = vrot.slane %v1790_v32, %v6302_v29  ;;  %v7529_v32 = vld [vmem:[#allocation14_spill] sm:$0xff] }
 0x39f   : > { %5690 = vmatmul.mubr.msk.bf16.vlgmr.msra.gmra.mxu0 %vm1696_vm11, %v2482_v26  ;;  %5695 = vmatprep.subr.bf16.mxu1 %v7516_v52  ;;  %v2662_v26 = vrot.slane %v5149_v23, %v6314_v34 }
 0x3a0   : > { %5702 = vmatpush3.bf16.msra.mxu0 %v6975_v4  ;;  %5705 = vmatprep.mubr.msk.bf16.mxu0 %vm6185_vm2, %v7516_v52  ;;  %v5156_v21 = vpack.i.b16 %v1797_v8, %v1797_v8 }
 0x3a1   : > { %5703 = vmatprep.subr.bf16.mxu0 %v7516_v52 }
 0x3a2   : > { %5696 = vmatpush3.bf16.msra.mxu1 %v6127_v35  ;;  %v2722_v35 = vrot.slane %v2718_v25, %v6314_v34  ;;  %v7531_v25 = vld [vmem:[#allocation16_spill] sm:$0xff] }
 0x3a3   : > { %5709 = vmatprep.subr.bf16.mxu1 %v7516_v52 }
 0x3a4   : > { %5704 = vmatpush3.bf16.msra.mxu0 %v6128_v16  ;;  %v2782_v16 = vrot.slane %v5156_v21, %v6314_v34 }
 0x3a5   : > { %5698 = vmatmul.mubr.msk.bf16.vlgmr.msra.gmra.mxu1 %vm1696_vm11, %v2542_v38  ;;  %5717 = vmatprep.subr.bf16.mxu0 %v7516_v52 }
 0x3a6   : > { %5710 = vmatpush3.bf16.msra.mxu1 %v7003_v60  ;;  %5713 = vmatprep.mubr.msk.bf16.mxu1 %vm6185_vm2, %v7516_v52 }
 0x3a7   : > { %5706 = vmatmul.mubr.msk.bf16.vlgmr.msra.gmra.mxu0 %vm1696_vm11, %v2602_v27  ;;  %5711 = vmatprep.subr.bf16.mxu1 %v7516_v52  ;;  %v7526_v27 = vld [vmem:[#allocation11_spill] sm:$0xff] }
 0x3a8   : > { %5718 = vmatpush3.bf16.msra.mxu0 %v7008_v6  ;;  %5721 = vmatprep.mubr.msk.bf16.mxu0 %vm6185_vm2, %v7516_v52 }
 0x3a9   : > { %5719 = vmatprep.subr.bf16.mxu0 %v7516_v52 }
 0x3aa   : > { %5712 = vmatpush3.bf16.msra.mxu1 %v6131_v53  ;;  %v7527_v53 = vld [vmem:[#allocation12_spill] sm:$0xff] }
 0x3ab   : > { %5725 = vmatprep.subr.bf16.mxu1 %v7516_v52 }
 0x3ac   : > { %5720 = vmatpush3.bf16.msra.mxu0 %v6132_v44 }
 0x3ad   : > { %5733 = vmatprep.subr.bf16.mxu0 %v2898_v12  ;;  %5714 = vmatmul.mubr.msk.bf16.vlgmr.msra.gmra.mxu1 %vm1696_vm11, %v2662_v26 }
 0x3ae   : > { %5726 = vmatpush3.bf16.msra.mxu1 %v7033_v24  ;;  %5729 = vmatprep.mubr.msk.bf16.mxu1 %vm6185_vm2, %v7516_v52 }
 0x3af   : > { %5722 = vmatmul.mubr.msk.bf16.vlgmr.msra.gmra.mxu0 %vm1696_vm11, %v2722_v35  ;;  %5727 = vmatprep.subr.bf16.mxu1 %v7516_v52 }
 0x3b0   : > { %5734 = vmatpush3.bf16.msra.mxu0 %v2898_v12  ;;  %5737 = vmatprep.mubr.msk.bf16.mxu0 %vm1696_vm11, %v6794_v0  ;;  %v3084_v0 = vpop.permute.xlu1 %3083  ;;  %v7532_v12 = vld [vmem:[#allocation17_spill] sm:$0xff] }
 0x3b1   : > { %5735 = vmatprep.subr.bf16.mxu0 %v2839_v1 }
 0x3b2   : > { %5728 = vmatpush3.bf16.msra.mxu1 %v6134_v36  ;;  %v7533_v36 = vld [vmem:[#allocation18_spill] sm:$0xff] }
 0x3b3   : > { %5741 = vmatprep.subr.bf16.mxu1 %v7516_v52 }
 0x3b4   : > { %5736 = vmatpush3.bf16.msra.mxu0 %v2839_v1 }
 0x3b5   : > { %5730 = vmatmul.mubr.msk.bf16.vlgmr.msra.gmra.mxu1 %vm1696_vm11, %v2782_v16  ;;  %5749 = vmatprep.subr.bf16.mxu0 %v7516_v52 }
 0x3b6   : > { %5742 = vmatpush3.bf16.xpose.msra.mxu1 %v6258_v9  ;;  %5745 = vmatprep.mubr.msk.bf16.mxu1 %vm6185_vm2, %v7516_v52  ;;  %v2949_v9 = vpop.permute.xlu1 %2948 }
 0x3b7   : > { %5738 = vmatmul.mubr.msk.bf16.vlgmr.msra.gmra.mxu0 %vm1696_vm11, %v1732_v46  ;;  %5743 = vmatprep.subr.bf16.mxu1 %v7516_v52  ;;  %v7525_v46 = vld [vmem:[#allocation10_spill] sm:$0xff] }
 0x3b8   : > { %5750 = vmatpush3.bf16.xpose.msra.mxu0 %v6266_v11  ;;  %5753 = vmatprep.mubr.msk.bf16.mxu0 %vm6185_vm2, %v7516_v52 }
 0x3b9   : > { %5751 = vmatprep.subr.bf16.mxu0 %v7516_v52 }
 0x3ba   : > { %v3174_v11 = vpop.permute.xlu1 %3173 }
 0x3be   : > { %5744 = vmatpush3.bf16.xpose.msra.mxu1 %v6275_v13  ;;  %v3039_v13 = vpop.permute.xlu1 %3038 }
 0x3bf   : > { %5757 = vmatprep.subr.bf16.mxu1 %v7516_v52 }
 0x3c0   : > { %5752 = vmatpush3.bf16.xpose.msra.mxu0 %v6282_v15  ;;  %v3129_v15 = vpop.permute.xlu0 %3128 }
 0x3c1   : > { %5765 = vmatprep.subr.bf16.mxu0 %v7516_v52 }
 0x3c5   : > { %5746 = vmatmul.mubr.msk.bf16.vlgmr.msra.gmra.mxu1 %vm533_vm1, %v2949_v9 }
 0x3c6   : > { %5758 = vmatpush3.bf16.xpose.msra.mxu1 %v6323_v39  ;;  %5761 = vmatprep.mubr.msk.bf16.mxu1 %vm6185_vm2, %v7516_v52  ;;  %v3219_v39 = vpop.permute.xlu0 %3218 }
 0x3c7   : > { %5754 = vmatmul.mubr.msk.bf16.vlgmr.msra.gmra.mxu0 %vm533_vm1, %v2994_v49  ;;  %5759 = vmatprep.subr.bf16.mxu1 %v7516_v52 }
 0x3c8   : > { %5766 = vmatpush3.bf16.xpose.msra.mxu0 %v6331_v43  ;;  %5769 = vmatprep.mubr.msk.bf16.mxu0 %vm6185_vm2, %v7516_v52  ;;  %v3264_v43 = vpop.permute.xlu1 %3263 }
 0x3c9   : > { %5767 = vmatprep.subr.bf16.mxu0 %v7516_v52 }
 0x3ce   : > { %5760 = vmatpush3.bf16.xpose.msra.mxu1 %v6351_v47  ;;  %v7517_v47 = vld [vmem:[#allocation2_spill] sm:$0xff] }
 0x3cf   : > { %5773 = vmatprep.subr.bf16.mxu1 %v7516_v52 }
 0x3d0   : > { %5768 = vmatpush3.bf16.xpose.msra.mxu0 %v6354_v48  ;;  %v7518_v48 = vld [vmem:[#allocation3_spill] sm:$0xff] }
 0x3d1   : > { %5781 = vmatprep.subr.bf16.mxu0 %v7516_v52 }
 0x3d5   : > { %5762 = vmatmul.mubr.msk.bf16.vlgmr.msra.gmra.mxu1 %vm533_vm1, %v3039_v13 }
 0x3d6   : > { %5774 = vmatpush3.bf16.xpose.msra.mxu1 %v6370_v55  ;;  %5777 = vmatprep.mubr.msk.bf16.mxu1 %vm6185_vm2, %v7516_v52  ;;  %v7519_v55 = vld [vmem:[#allocation4_spill] sm:$0xff] }
 0x3d7   : > { %5770 = vmatmul.mubr.msk.bf16.vlgmr.msra.gmra.mxu0 %vm533_vm1, %v3084_v0  ;;  %5775 = vmatprep.subr.bf16.mxu1 %v7516_v52 }
 0x3d8   : > { %5782 = vmatpush3.bf16.xpose.msra.mxu0 %v6378_v57  ;;  %5785 = vmatprep.mubr.msk.bf16.mxu0 %vm6185_vm2, %v7516_v52  ;;  %v7520_v57 = vld [vmem:[#allocation5_spill] sm:$0xff] }
 0x3d9   : > { %5783 = vmatprep.subr.bf16.mxu0 %v7516_v52 }
 0x3de   : > { %5776 = vmatpush3.bf16.xpose.msra.mxu1 %v6397_v61  ;;  %v3309_v61 = vpop.permute.xlu0 %3308 }
 0x3df   : > { %5789 = vmatprep.subr.bf16.mxu1 %v7516_v52 }
 0x3e0   : > { %5784 = vmatpush3.bf16.xpose.msra.mxu0 %v6400_v62  ;;  %v3354_v62 = vpop.permute.xlu1 %3353 }
 0x3e1   : > { %5797 = vmatprep.subr.bf16.mxu0 %v7516_v52 }
 0x3e2   : > { %v3399_v3 = vpop.permute.xlu0 %3398 }
 0x3e4   : > { %v3444_v14 = vpop.permute.xlu1 %3443 }
 0x3e5   : > { %5778 = vmatmul.mubr.msk.bf16.vlgmr.msra.gmra.mxu1 %vm533_vm1, %v3129_v15 }
 0x3e6   : > { %5790 = vmatpush3.bf16.xpose.msra.mxu1 %v6416_v5  ;;  %5793 = vmatprep.mubr.msk.bf16.mxu1 %vm6185_vm2, %v7516_v52  ;;  %v7521_v5 = vld [vmem:[#allocation6_spill] sm:$0xff]  ;;  %v3624_v26 = vpop.permute.xlu0 %3623 }
 0x3e7   : > { %5786 = vmatmul.mubr.msk.bf16.vlgmr.msra.gmra.mxu0 %vm533_vm1, %v3174_v11  ;;  %5791 = vmatprep.subr.bf16.mxu1 %v7516_v52 }
 0x3e8   : > { %5798 = vmatpush3.bf16.xpose.msra.mxu0 %v6424_v7  ;;  %5801 = vmatprep.mubr.msk.bf16.mxu0 %vm6185_vm2, %v7516_v52  ;;  %v7522_v7 = vld [vmem:[#allocation7_spill] sm:$0xff]  ;;  %v3534_v38 = vpop.permute.xlu1 %3533 }
 0x3e9   : > { %5799 = vmatprep.subr.bf16.mxu0 %v7516_v52 }
 0x3ea   : > { %v3718_v0 = vpop.permute.xlu0 %3717 }
 0x3ec   : > { %v3720_v2 = vpop.permute.xlu1 %3719 }
 0x3ed   : > { %v3779_v21 = vsel %vm533_vm1, %v3720_v2, 0 }
 0x3ee   : > { %5792 = vmatpush3.bf16.xpose.msra.mxu1 %v6443_v18  ;;  %v7523_v18 = vld [vmem:[#allocation8_spill] sm:$0xff] }
 0x3ef   : > { %5805 = vmatprep.subr.bf16.mxu1 %v7516_v52 }
 0x3f0   : > { %5800 = vmatpush3.bf16.xpose.msra.mxu0 %v6446_v19  ;;  %v7524_v19 = vld [vmem:[#allocation9_spill] sm:$0xff]  ;;  %v3489_v23 = vpop.permute.xlu1 %3488 }
 0x3f1   : > { %5813 = vmatprep.subr.bf16.mxu0 %v7516_v52 }
 0x3f4   : > { %v3714_v44 = vpop.permute.xlu1 %3713 }
 0x3f5   : > { %5794 = vmatmul.mubr.msk.bf16.vlgmr.msra.gmra.mxu1 %vm533_vm1, %v3219_v39 }
 0x3f6   : > { %5806 = vmatpush3.bf16.xpose.msra.mxu1 %v7517_v47  ;;  %5809 = vmatprep.mubr.msk.bf16.mxu1 %vm6185_vm2, %v7516_v52 }
 0x3f7   : > { %5802 = vmatmul.mubr.msk.bf16.vlgmr.msra.gmra.mxu0 %vm533_vm1, %v3264_v43  ;;  %5807 = vmatprep.subr.bf16.mxu1 %v7516_v52 }
 0x3f8   : > { %5814 = vmatpush3.bf16.xpose.msra.mxu0 %v7518_v48  ;;  %5817 = vmatprep.mubr.msk.bf16.mxu0 %vm6185_vm2, %v7516_v52  ;;  %v3579_v8 = vpop.permute.xlu1 %3578  ;;  %v3716_v48 = vpop.permute.xlu0 %3715 }
 0x3f9   : > { %5815 = vmatprep.subr.bf16.mxu0 %v7516_v52 }
 0x3fe   : > { %5808 = vmatpush3.bf16.xpose.msra.mxu1 %v7519_v55 }
 0x3ff   : > { %5821 = vmatprep.subr.bf16.mxu1 %v7516_v52 }
 0x400   : > { %5816 = vmatpush3.bf16.xpose.msra.mxu0 %v7520_v57  ;;  %v7534_v57 = vld [vmem:[#allocation19_spill] sm:$0xff] }
 0x401   : > { %5829 = vmatprep.subr.bf16.mxu0 %v7516_v52 }
 0x405   : > { %5810 = vmatmul.mubr.msk.bf16.vlgmr.msra.gmra.mxu1 %vm533_vm1, %v3309_v61  ;;  %v3776_v61 = vsel %vm533_vm1, %v3718_v0, 0 }
 0x406   : > { %5822 = vmatpush3.bf16.xpose.msra.mxu1 %v7521_v5  ;;  %5825 = vmatprep.mubr.msk.bf16.mxu1 %vm6185_vm2, %v7516_v52 }
 0x407   : > { %5818 = vmatmul.mubr.msk.bf16.vlgmr.msra.gmra.mxu0 %vm533_vm1, %v3354_v62  ;;  %5823 = vmatprep.subr.bf16.mxu1 %v7516_v52 }
 0x408   : > { %5830 = vmatpush3.bf16.xpose.msra.mxu0 %v7522_v7  ;;  %5833 = vmatprep.mubr.msk.bf16.mxu0 %vm6185_vm2, %v7516_v52 }
 0x409   : > { %5831 = vmatprep.subr.bf16.mxu0 %v7516_v52 }
 0x40e   : > { %5824 = vmatpush3.bf16.xpose.msra.mxu1 %v7523_v18 }
 0x40f   : > { %5837 = vmatprep.subr.bf16.mxu1 %v7516_v52 }
 0x410   : > { %5832 = vmatpush3.bf16.xpose.msra.mxu0 %v7524_v19 }
 0x411   : > { %5845 = vmatprep.subr.bf16.mxu0 %v7516_v52 }
 0x415   : > { %5826 = vmatmul.mubr.msk.bf16.vlgmr.msra.gmra.mxu1 %vm533_vm1, %v3399_v3 }
 0x416   : > { %5838 = vmatpush3.bf16.xpose.msra.mxu1 %v7525_v46  ;;  %5841 = vmatprep.mubr.msk.bf16.mxu1 %vm6185_vm2, %v7516_v52 }
 0x417   : > { %5834 = vmatmul.mubr.msk.bf16.vlgmr.msra.gmra.mxu0 %vm533_vm1, %v3444_v14  ;;  %5839 = vmatprep.subr.bf16.mxu1 %v7516_v52 }
 0x418   : > { %5846 = vmatpush3.bf16.xpose.msra.mxu0 %v7526_v27  ;;  %5849 = vmatprep.mubr.msk.bf16.mxu0 %vm6185_vm2, %v7516_v52  ;;  %v3669_v27 = vpop.permute.xlu0 %3668 }
 0x419   : > { %5847 = vmatprep.subr.bf16.mxu0 %v7516_v52 }
 0x41e   : > { %5840 = vmatpush3.bf16.xpose.msra.mxu1 %v7527_v53 }
 0x41f   : > { %5853 = vmatprep.subr.bf16.mxu1 %v7516_v52 }
 0x420   : > { %5848 = vmatpush3.bf16.xpose.msra.mxu0 %v7528_v50 }
 0x421   : > { %5861 = vmatprep.subr.bf16.mxu0 %v7516_v52 }
 0x425   : > { %5842 = vmatmul.mubr.msk.bf16.vlgmr.msra.gmra.mxu1 %vm533_vm1, %v3489_v23 }
 0x426   : > { %5854 = vmatpush3.bf16.xpose.msra.mxu1 %v7529_v32  ;;  %5857 = vmatprep.mubr.msk.bf16.mxu1 %vm6185_vm2, %v7516_v52 }
 0x427   : > { %5850 = vmatmul.mubr.msk.bf16.vlgmr.msra.gmra.mxu0 %vm533_vm1, %v3534_v38  ;;  %5855 = vmatprep.subr.bf16.mxu1 %v7516_v52 }
 0x428   : > { %5862 = vmatpush3.bf16.xpose.msra.mxu0 %v7530_v63  ;;  %5865 = vmatprep.mubr.msk.bf16.mxu0 %vm6185_vm2, %v7516_v52 }
 0x429   : > { %5863 = vmatprep.subr.bf16.mxu0 %v7516_v52 }
 0x42e   : > { %5856 = vmatpush3.bf16.xpose.msra.mxu1 %v7531_v25 }
 0x42f   : > { %5869 = vmatprep.subr.bf16.mxu1 %v7516_v52 }
 0x430   : > { %5864 = vmatpush3.bf16.xpose.msra.mxu0 %v7532_v12 }
 0x431   : > { %6039 = vmatprep.subr.msk.bf16.mxu0 %vm533_vm1, %v3720_v2 }
 0x435   : > { %5858 = vmatmul.mubr.msk.bf16.vlgmr.msra.gmra.mxu1 %vm533_vm1, %v3579_v8  ;;  %v1872_v35 = vpop.f32.mrf.mxu1 }
 0x436   : > { %5870 = vmatpush3.bf16.xpose.msra.mxu1 %v7533_v36  ;;  %5873 = vmatprep.mubr.msk.bf16.mxu1 %vm6185_vm2, %v7516_v52 }
 0x437   : > { %5866 = vmatmul.mubr.msk.bf16.vlgmr.msra.gmra.mxu0 %vm533_vm1, %v3624_v26  ;;  %v5603_v1 = vpop.f32.mrf.mxu1  ;;  %v1932_v16 = vpop.f32.mrf.mxu0  ;;  %5871 = vmatprep.subr.bf16.mxu1 %v7516_v52 }
 0x438   : > { %v2860_v9 = vrot.slane %v1932_v16, 7  ;;  %5878 = vmatpush3.bf16.xpose.msra.mxu0 %v3779_v21  ;;  %5881 = vmatprep.mubr.msk.bf16.mxu0 %vm533_vm1, %v3714_v44 }
 0x439   : > { %6040 = vmatprep.subr.msk.bf16.mxu0 %vm533_vm1, %v3718_v0  ;;  %v1875_v49 = vpop.f32.mrf.mxu1  ;;  %v5611_v11 = vpop.f32.mrf.mxu0 }
 0x43a   : > { %v2861_v13 = vsel %vm1599_vm3, %v2860_v9, %v1872_v35 }
 0x43b   : > { %v5604_v15 = vpop.f32.mrf.mxu1  ;;  %v1935_v39 = vpop.f32.mrf.mxu0 }
 0x43d   : > { %v5612_v43 = vpop.f32.mrf.mxu0  ;;  %v1992_v47 = vpop.f32.mrf.mxu1 }
 0x43e   : > { %v2862_v55 = vrot.slane %v1992_v47, 6  ;;  %5872 = vmatpush3.bf16.xpose.msra.mxu1 %v7534_v57 }
 0x43f   : > { %v5619_v62 = vpop.f32.mrf.mxu1  ;;  %v2052_v5 = vpop.f32.mrf.mxu0  ;;  %5885 = vmatprep.subr.bf16.mxu1 %v7516_v52 }
 0x440   : > { %v2863_v7 = vsel %vm1602_vm4, %v2862_v55, %v2861_v13  ;;  %v2864_v18 = vrot.slane %v2052_v5, 5  ;;  %5880 = vmatpush3.bf16.xpose.msra.mxu0 %v3776_v61 }
 0x441   : > { %v1995_v19 = vpop.f32.mrf.mxu1  ;;  %v5627_v14 = vpop.f32.mrf.mxu0  ;;  %5893 = vmatprep.subr.bf16.mxu0 %v7516_v52 }
 0x442   : > { %v2865_v3 = vsel %vm1605_vm5, %v2864_v18, %v2863_v7 }
 0x443   : > { %v5620_v46 = vpop.f32.mrf.mxu1  ;;  %v2055_v38 = vpop.f32.mrf.mxu0 }
 0x445   : > { %5874 = vmatmul.mubr.msk.bf16.vlgmr.msra.gmra.mxu1 %vm533_vm1, %v3669_v27  ;;  %v5628_v2 = vpop.f32.mrf.mxu0  ;;  %v2112_v53 = vpop.f32.mrf.mxu1 }
 0x446   : > { %v2866_v50 = vrot.slane %v2112_v53, 4  ;;  %5886 = vmatpush3.bf16.msra.mxu1 %v6746_v45  ;;  %5889 = vmatprep.mubr.msk.bf16.mxu1 %vm6185_vm2, %v7516_v52 }
 0x447   : > { %5882 = vmatmul.mubr.msk.bf16.vlgmr.msra.gmra.mxu0 %vm533_vm1, %v3716_v48  ;;  %v5635_v23 = vpop.f32.mrf.mxu1  ;;  %v2172_v32 = vpop.f32.mrf.mxu0  ;;  %5887 = vmatprep.subr.bf16.mxu1 %v7516_v52 }
 0x448   : > { %v2867_v63 = vsel %vm1608_vm6, %v2866_v50, %v2865_v3  ;;  %v2868_v44 = vrot.slane %v2172_v32, 3  ;;  %5894 = vmatpush3.bf16.msra.mxu0 %v6749_v59  ;;  %5897 = vmatprep.mubr.msk.bf16.mxu0 %vm6185_vm2, %v7516_v52 }
 0x449   : > { %v2115_v25 = vpop.f32.mrf.mxu1  ;;  %v5643_v12 = vpop.f32.mrf.mxu0  ;;  %5895 = vmatprep.subr.bf16.mxu0 %v7516_v52 }
 0x44a   : > { %v2869_v45 = vsel %vm1611_vm7, %v2868_v44, %v2867_v63  ;;  %5888 = vmatpush3.bf16.msra.mxu1 %v6757_v56 }
 0x44b   : > { %v5636_v26 = vpop.f32.mrf.mxu1  ;;  %v2175_v8 = vpop.f32.mrf.mxu0  ;;  %5901 = vmatprep.subr.bf16.mxu1 %v7516_v52 }
 0x44c   : > { %5896 = vmatpush3.bf16.msra.mxu0 %v6764_v41 }
 0x44d   : > { %v5644_v35 = vpop.f32.mrf.mxu0  ;;  %v2232_v36 = vpop.f32.mrf.mxu1  ;;  %5909 = vmatprep.subr.bf16.mxu0 %v7516_v52 }
 0x44e   : > { %v2870_v59 = vrot.slane %v2232_v36, 2 }
 0x44f   : > { %v5651_v21 = vpop.f32.mrf.mxu1  ;;  %v2292_v1 = vpop.f32.mrf.mxu0 }
 0x450   : > { %v2872_v16 = vrot.slane %v2292_v1, 1  ;;  %v2871_v0 = vsel %vm1614_vm8, %v2870_v59, %v2869_v45 }
 0x451   : > { %v2235_v9 = vpop.f32.mrf.mxu1  ;;  %v5659_v49 = vpop.f32.mrf.mxu0 }
 0x452   : > { %v2873_v56 = vsel %vm1617_vm9, %v2872_v16, %v2871_v0 }
 0x453   : > { %v5652_v11 = vpop.f32.mrf.mxu1  ;;  %v2295_v13 = vpop.f32.mrf.mxu0 }
 0x455   : > { %v5660_v15 = vpop.f32.mrf.mxu0  ;;  %v2352_v39 = vpop.f32.mrf.mxu1 }
 0x457   : > { %v5667_v43 = vpop.f32.mrf.mxu1  ;;  %v2412_v41 = vpop.f32.mrf.mxu0 }
 0x458   : > { %v2874_v47 = vrot.slane %v2412_v41, 7 }
 0x459   : > { %v2355_v48 = vpop.f32.mrf.mxu1  ;;  %v5675_v55 = vpop.f32.mrf.mxu0 }
 0x45a   : > { %v2875_v57 = vsel %vm1599_vm3, %v2874_v47, %v2352_v39 }
 0x45b   : > { %v5668_v61 = vpop.f32.mrf.mxu1  ;;  %v2415_v62 = vpop.f32.mrf.mxu0 }
 0x45d   : > { %v5676_v5 = vpop.f32.mrf.mxu0  ;;  %v2472_v7 = vpop.f32.mrf.mxu1 }
 0x45e   : > { %v2876_v18 = vrot.slane %v2472_v7, 6 }
 0x45f   : > { %v5683_v19 = vpop.f32.mrf.mxu1  ;;  %v2532_v14 = vpop.f32.mrf.mxu0 }
 0x460   : > { %v2877_v3 = vsel %vm1602_vm4, %v2876_v18, %v2875_v57  ;;  %v2878_v46 = vrot.slane %v2532_v14, 5 }
 0x461   : > { %v2475_v38 = vpop.f32.mrf.mxu1  ;;  %v5691_v27 = vpop.f32.mrf.mxu0 }
 0x462   : > { %v2879_v2 = vsel %vm1605_vm5, %v2878_v46, %v2877_v3 }
 0x463   : > { %v5684_v53 = vpop.f32.mrf.mxu1  ;;  %v2535_v50 = vpop.f32.mrf.mxu0 }
 0x465   : > { %v5692_v23 = vpop.f32.mrf.mxu0  ;;  %v2592_v32 = vpop.f32.mrf.mxu1 }
 0x466   : > { %v2880_v63 = vrot.slane %v2592_v32, 4 }
 0x467   : > { %v5699_v44 = vpop.f32.mrf.mxu1  ;;  %v2652_v25 = vpop.f32.mrf.mxu0 }
 0x468   : > { %v2881_v12 = vsel %vm1608_vm6, %v2880_v63, %v2879_v2  ;;  %v2882_v45 = vrot.slane %v2652_v25, 3 }
 0x469   : > { %v2595_v26 = vpop.f32.mrf.mxu1  ;;  %v5707_v8 = vpop.f32.mrf.mxu0 }
 0x46a   : > { %v2883_v35 = vsel %vm1611_vm7, %v2882_v45, %v2881_v12 }
 0x46b   : > { %v5700_v36 = vpop.f32.mrf.mxu1  ;;  %v2655_v59 = vpop.f32.mrf.mxu0 }
 0x46d   : > { %v5708_v21 = vpop.f32.mrf.mxu0  ;;  %v2712_v1 = vpop.f32.mrf.mxu1 }
 0x46e   : > { %v2884_v16 = vrot.slane %v2712_v1, 2 }
 0x46f   : > { %v5715_v0 = vpop.f32.mrf.mxu1  ;;  %v2772_v9 = vpop.f32.mrf.mxu0 }
 0x470   : > { %v2886_v49 = vrot.slane %v2772_v9, 1  ;;  %v2885_v11 = vsel %vm1614_vm8, %v2884_v16, %v2883_v35 }
 0x471   : > { %v2715_v13 = vpop.f32.mrf.mxu1  ;;  %v5723_v15 = vpop.f32.mrf.mxu0 }
 0x472   : > { %v2887_v39 = vsel %vm1617_vm9, %v2886_v49, %v2885_v11 }
 0x473   : > { %v5716_v43 = vpop.f32.mrf.mxu1  ;;  %v2775_v41 = vpop.f32.mrf.mxu0 }
 0x475   : > { %v5724_v47 = vpop.f32.mrf.mxu0  ;;  %v2832_v48 = vpop.f32.mrf.mxu1 }
 0x477   : > { %v5731_v55 = vpop.f32.mrf.mxu1  ;;  %v5739_v57 = vpop.f32.mrf.mxu0 }
 0x478   : > { %v7207_v61 = vadd.f32 %v5739_v57, %v2832_v48 }
 0x479   : > { %v2835_v62 = vpop.f32.mrf.mxu1  ;;  %v2934_v5 = vpop.f32.mrf.mxu0 }
 0x47a   : > { %v7209_v7 = vadd.f32 %v2934_v5, %v2873_v56 }
 0x47b   : > { %v5732_v18 = vpop.f32.mrf.mxu1  ;;  %v5740_v19 = vpop.f32.mrf.mxu0 }
 0x47d   : > { %v2937_v14 = vpop.f32.mrf.mxu0 }
 0x47e   : > { %v7211_v3 = vadd.f32 %v2937_v14, %v2887_v39 }
 0x485   : > { %v2987_v46 = vpop.f32.mrf.mxu1 }
 0x487   : > { %v5747_v38 = vpop.f32.mrf.mxu1  ;;  %v3032_v27 = vpop.f32.mrf.mxu0 }
 0x488   : > { %v3738_v2 = vrot.slane %v3032_v27, 7 }
 0x489   : > { %v2990_v53 = vpop.f32.mrf.mxu1  ;;  %v5755_v50 = vpop.f32.mrf.mxu0 }
 0x48a   : > { %v3739_v23 = vsel %vm1599_vm3, %v3738_v2, %v2987_v46 }
 0x48b   : > { %v5748_v32 = vpop.f32.mrf.mxu1  ;;  %v3035_v63 = vpop.f32.mrf.mxu0 }
 0x48d   : > { %v5756_v44 = vpop.f32.mrf.mxu0 }
 0x495   : > { %v3077_v25 = vpop.f32.mrf.mxu1 }
 0x496   : > { %v3740_v12 = vrot.slane %v3077_v25, 6 }
 0x497   : > { %v5763_v56 = vpop.f32.mrf.mxu1  ;;  %v3122_v45 = vpop.f32.mrf.mxu0 }
 0x498   : > { %v3741_v26 = vsel %vm1602_vm4, %v3740_v12, %v3739_v23  ;;  %v3742_v8 = vrot.slane %v3122_v45, 5 }
 0x499   : > { %v3080_v35 = vpop.f32.mrf.mxu1  ;;  %v5771_v36 = vpop.f32.mrf.mxu0 }
 0x49a   : > { %v3743_v59 = vsel %vm1605_vm5, %v3742_v8, %v3741_v26 }
 0x49b   : > { %v5764_v21 = vpop.f32.mrf.mxu1  ;;  %v3125_v1 = vpop.f32.mrf.mxu0 }
 0x49d   : > { %v5772_v16 = vpop.f32.mrf.mxu0 }
 0x4a5   : > { %v3167_v0 = vpop.f32.mrf.mxu1 }
 0x4a6   : > { %v3744_v9 = vrot.slane %v3167_v0, 4 }
 0x4a7   : > { %v5779_v49 = vpop.f32.mrf.mxu1  ;;  %v3212_v11 = vpop.f32.mrf.mxu0 }
 0x4a8   : > { %v3745_v13 = vsel %vm1608_vm6, %v3744_v9, %v3743_v59  ;;  %v3746_v15 = vrot.slane %v3212_v11, 3 }
 0x4a9   : > { %v3170_v39 = vpop.f32.mrf.mxu1  ;;  %v5787_v43 = vpop.f32.mrf.mxu0 }
 0x4aa   : > { %v3747_v41 = vsel %vm1611_vm7, %v3746_v15, %v3745_v13 }
 0x4ab   : > { %v5780_v47 = vpop.f32.mrf.mxu1  ;;  %v3215_v48 = vpop.f32.mrf.mxu0 }
 0x4ad   : > { %v5788_v55 = vpop.f32.mrf.mxu0 }
 0x4b5   : > { %v3257_v57 = vpop.f32.mrf.mxu1 }
 0x4b6   : > { %v3748_v62 = vrot.slane %v3257_v57, 2 }
 0x4b7   : > { %v5795_v5 = vpop.f32.mrf.mxu1  ;;  %v3302_v18 = vpop.f32.mrf.mxu0 }
 0x4b8   : > { %v3750_v19 = vrot.slane %v3302_v18, 1  ;;  %v3749_v14 = vsel %vm1614_vm8, %v3748_v62, %v3747_v41 }
 0x4b9   : > { %v3260_v46 = vpop.f32.mrf.mxu1  ;;  %v5803_v38 = vpop.f32.mrf.mxu0 }
 0x4ba   : > { %v3751_v27 = vsel %vm1617_vm9, %v3750_v19, %v3749_v14 }
 0x4bb   : > { %v5796_v2 = vpop.f32.mrf.mxu1  ;;  %v3305_v53 = vpop.f32.mrf.mxu0 }
 0x4bd   : > { %v5804_v50 = vpop.f32.mrf.mxu0 }
 0x4c5   : > { %v3347_v23 = vpop.f32.mrf.mxu1 }
 0x4c7   : > { %v5811_v32 = vpop.f32.mrf.mxu1  ;;  %v3392_v63 = vpop.f32.mrf.mxu0 }
 0x4c8   : > { %v3752_v18 = vrot.slane %v3392_v63, 7 }
 0x4c9   : > { %v3350_v44 = vpop.f32.mrf.mxu1  ;;  %v5819_v25 = vpop.f32.mrf.mxu0 }
 0x4ca   : > { %v3753_v46 = vsel %vm1599_vm3, %v3752_v18, %v3347_v23 }
 0x4cb   : > { %v5812_v12 = vpop.f32.mrf.mxu1  ;;  %v3395_v56 = vpop.f32.mrf.mxu0 }
 0x4cd   : > { %v5820_v45 = vpop.f32.mrf.mxu0 }
 0x4d5   : > { %v3437_v26 = vpop.f32.mrf.mxu1 }
 0x4d6   : > { %v3754_v14 = vrot.slane %v3437_v26, 6 }
 0x4d7   : > { %v5827_v8 = vpop.f32.mrf.mxu1  ;;  %v3482_v35 = vpop.f32.mrf.mxu0 }
 0x4d8   : > { %v3756_v38 = vrot.slane %v3482_v35, 5  ;;  %v3755_v2 = vsel %vm1602_vm4, %v3754_v14, %v3753_v46 }
 0x4d9   : > { %v3440_v36 = vpop.f32.mrf.mxu1  ;;  %v5835_v59 = vpop.f32.mrf.mxu0 }
 0x4da   : > { %v3757_v50 = vsel %vm1605_vm5, %v3756_v38, %v3755_v2 }
 0x4db   : > { %v5828_v21 = vpop.f32.mrf.mxu1  ;;  %v3485_v1 = vpop.f32.mrf.mxu0 }
 0x4dd   : > { %v5836_v16 = vpop.f32.mrf.mxu0 }
 0x4e5   : > { %v3527_v0 = vpop.f32.mrf.mxu1 }
 0x4e6   : > { %v3758_v53 = vrot.slane %v3527_v0, 4 }
 0x4e7   : > { %v5843_v9 = vpop.f32.mrf.mxu1  ;;  %v3572_v49 = vpop.f32.mrf.mxu0 }
 0x4e8   : > { %v3760_v32 = vrot.slane %v3572_v49, 3  ;;  %v3759_v25 = vsel %vm1608_vm6, %v3758_v53, %v3757_v50 }
 0x4e9   : > { %v3530_v11 = vpop.f32.mrf.mxu1  ;;  %v5851_v13 = vpop.f32.mrf.mxu0 }
 0x4ea   : > { %v3761_v8 = vsel %vm1611_vm7, %v3760_v32, %v3759_v25 }
 0x4eb   : > { %v5844_v15 = vpop.f32.mrf.mxu1  ;;  %v3575_v39 = vpop.f32.mrf.mxu0 }
 0x4ed   : > { %v5852_v43 = vpop.f32.mrf.mxu0 }
 0x4f5   : > { %v3617_v41 = vpop.f32.mrf.mxu1 }
 0x4f6   : > { %v3762_v12 = vrot.slane %v3617_v41, 2 }
 0x4f7   : > { %v5859_v47 = vpop.f32.mrf.mxu1  ;;  %v3662_v48 = vpop.f32.mrf.mxu0 }
 0x4f8   : > { %v3764_v63 = vrot.slane %v3662_v48, 1  ;;  %v3763_v23 = vsel %vm1614_vm8, %v3762_v12, %v3761_v8 }
 0x4f9   : > { %v3620_v55 = vpop.f32.mrf.mxu1  ;;  %v5867_v57 = vpop.f32.mrf.mxu0 }
 0x4fa   : > { %v3765_v16 = vsel %vm1617_vm9, %v3764_v63, %v3763_v23 }
 0x4fb   : > { %v5860_v62 = vpop.f32.mrf.mxu1  ;;  %v3665_v5 = vpop.f32.mrf.mxu0 }
 0x4fd   : > { %v5868_v19 = vpop.f32.mrf.mxu0 }
 0x505   : > { %v3707_v44 = vpop.f32.mrf.mxu1 }
 0x507   : > { %v5875_v56 = vpop.f32.mrf.mxu1  ;;  %v5883_v45 = vpop.f32.mrf.mxu0 }
 0x508   : > { %v3824_v49 = vadd.f32 %v5883_v45, %v3707_v44 }
 0x509   : > { %v3710_v36 = vpop.f32.mrf.mxu1  ;;  %v3815_v26 = vpop.f32.mrf.mxu0 }
 0x50a   : > { %v3816_v59 = vadd.f32 %v3815_v26, %v3751_v27  ;;  %v3835_v13 = vsel %vm1703_vm10, %v3824_v49, -inf }
 0x50b   : > { %v5876_v35 = vpop.f32.mrf.mxu1  ;;  %v5884_v21 = vpop.f32.mrf.mxu0 }
 0x50c   : > { %v3829_v1 = vsel %vm1696_vm11, %v3816_v59, -inf }
 0x50d   : > { %v3818_v0 = vpop.f32.mrf.mxu0  ;;  %3830 = vmax.xlane.f32.xlu1 %v3829_v1 }
 0x50e   : > { %v3819_v9 = vadd.f32 %v3818_v0, %v3765_v16 }
 0x510   : > { %v3832_v11 = vsel %vm1696_vm11, %v3819_v9, -inf }
 0x511   : > { %3833 = vmax.xlane.f32.xlu0 %v3832_v11 }
 0x515   : > { %3836 = vmax.xlane.f32.xlu0 %v3835_v13 }
 0x596   : > { %v3831_v15 = vpop.xlane.xlu1 %3830 }
 0x597   : > { %v3838_v27 = vsub.f32 %v3816_v59, %v3831_v15 }
 0x599   : > { %v3841_v39 = vmul.f32 1.442695, %v3838_v27 }
 0x59a   : > { %v3834_v43 = vpop.xlane.xlu0 %3833 }
 0x59b   : > { %6149 = vpow2.f32 %v3841_v39  ;;  %v3839_v41 = vsub.f32 %v3819_v9, %v3834_v43 }
 0x59d   : > { %v3843_v47 = vmul.f32 1.442695, %v3839_v41 }
 0x59e   : > { %v3837_v48 = vpop.xlane.xlu0 %3836 }
 0x59f   : > { %6151 = vpow2.f32 %v3843_v47  ;;  %v3840_v55 = vsub.f32 %v3824_v49, %v3837_v48 }
 0x5a1   : > { %v3845_v57 = vmul.f32 1.442695, %v3840_v55 }
 0x5a3   : > { %6153 = vpow2.f32 %v3845_v57 }
 0x5a8   : > { %v6150_v62 = vpop.eup %6149 }
 0x5a9   : > { %v3847_v5 = vsel %vm1696_vm11, %v6150_v62, 0.0 }
 0x5aa   : > { %3848 = vadd.xlane.f32.xlu1 %v3847_v5 }
 0x5ac   : > { %v6152_v18 = vpop.eup %6151 }
 0x5ad   : > { %v3850_v19 = vsel %vm1696_vm11, %v6152_v18, 0.0 }
 0x5ae   : > { %3851 = vadd.xlane.f32.xlu0 %v3850_v19 }
 0x5b0   : > { %v7232_v14 = vpop.eup %6153 }
 0x5b1   : > { %v3853_v46 = vsel %vm1703_vm10, %v7232_v14, 0.0 }
 0x5b2   : > { %3854 = vadd.xlane.f32.xlu1 %v3853_v46 }
 0x5c3   : > { %4762 = vrot.lane.b32.xlu1 %v6300_v28, %s6192_s23 }
 0x5c4   : > { %4764 = vrot.lane.b32.xlu0 %v6295_v17, %s6192_s23 }
 0x633   : > { %v3849_v38 = vpop.xlane.xlu1 %3848 }
 0x634   : > { %6155 = vrcp.f32 %v3849_v38 }
 0x637   : > { %v3852_v2 = vpop.xlane.xlu0 %3851 }
 0x638   : > { %6157 = vrcp.f32 %v3852_v2 }
 0x63b   : > { %v3855_v57 = vpop.xlane.xlu1 %3854 }
 0x63c   : > { %6159 = vrcp.f32 %v3855_v57 }
 0x641   : > { %v6156_v53 = vpop.eup %6155 }
 0x642   : > { %v3859_v32 = vmul.f32 %v6156_v53, %v6150_v62 }
 0x645   : > { %v6158_v50 = vpop.eup %6157 }
 0x646   : > { %v3860_v44 = vmul.f32 %v6158_v50, %v6152_v18 }
 0x648   : > { %v7238_v25 = vpack.c.bf16 %v3860_v44, %v3859_v32  ;;  %v5181_v49 = vpack.c.bf16 %v3860_v44, %v3860_v44 }
 0x64a   : > { %v3873_v12 = vrot.slane %v7238_v25, %v6302_v29  ;;  %v3880_v27 = vrot.slane %v5181_v49, %v6302_v29 }
 0x64c   : > { %v3881_v56 = vcombine.high %v3873_v12, %v3873_v12  ;;  %v3889_v45 = vrot.slane %v3873_v12, %v6302_v29  ;;  %v3896_v47 = vrot.slane %v3880_v27, %v6302_v29  ;;  %v3882_v62 = vcombine.high %v3880_v27, %v3880_v27 }
 0x64e   : > { %v3903_v28 = vrot.slane %v3881_v56, %v6302_v29  ;;  %v5182_v8 = vpack.i.b16 %v3889_v45, %v3889_v45  ;;  %v3930_v17 = vunpack.i.h.s16 %v3889_v45  ;;  %v3911_v21 = vcombine.high %v3889_v45, %v3889_v45  ;;  %v6160_v45 = vpop.eup %6159 }
 0x64f   : > { %v3938_v18 = vunpack.i.h.s16 %v3896_v47  ;;  %v5194_v19 = vpack.i.b16 %v3896_v47, %v3896_v47  ;;  %v3910_v46 = vrot.slane %v3882_v62, %v6302_v29  ;;  %v3912_v12 = vcombine.high %v3896_v47, %v3896_v47 }
 0x650   : > { %v3950_v63 = vrot.slane %v5182_v8, %v6314_v34  ;;  %v3994_v36 = vpack.i.b16 %v3930_v17, %v3930_v17  ;;  %v3932_v59 = vunpack.i.h.s16 %v3903_v28  ;;  %v5185_v23 = vpack.i.b16 %v3903_v28, %v3903_v28 }
 0x651   : > { %v3934_v0 = vunpack.i.h.s16 %v3911_v21  ;;  %v5188_v9 = vpack.i.b16 %v3911_v21, %v3911_v21  ;;  %v3913_v13 = vcombine.high %v3903_v28, %v3903_v28  ;;  %v4378_v38 = vpack.i.b16 %v3938_v18, %v3938_v18 }
 0x652   : > { %5890 = vmatmul.mubr.msk.bf16.vlgmr.msra.gmra.mxu1 %vm1696_vm11, %v3950_v63  ;;  %v3998_v26 = vrot.slane %v3994_v36, %v6314_v34  ;;  %v4090_v35 = vpack.i.b16 %v3932_v59, %v3932_v59  ;;  %v4046_v1 = vrot.slane %v5185_v23, %v6314_v34  ;;  %v4334_v2 = vrot.slane %v5194_v19, %v6314_v34 }
 0x653   : > { %5902 = vmatpush3.bf16.msra.mxu1 %v6807_v22  ;;  %5905 = vmatprep.mubr.msk.bf16.mxu1 %vm6185_vm2, %v7516_v52  ;;  %v6161_v22 = vld [vmem:[%s7476_s5 + $0x18] sm:$0xff]   ;;  %v4186_v11 = vpack.i.b16 %v3934_v0, %v3934_v0  ;;  %v4142_v15 = vrot.slane %v5188_v9, %v6314_v34  ;;  %v3936_v43 = vunpack.i.h.s16 %v3913_v13  ;;  %v5191_v41 = vpack.i.b16 %v3913_v13, %v3913_v13 }
 0x654   : > { %5898 = vmatmul.mubr.msk.bf16.vlgmr.msra.gmra.mxu0 %vm1696_vm11, %v3998_v26  ;;  %5903 = vmatprep.subr.bf16.mxu1 %v7516_v52  ;;  %v4094_v16 = vrot.slane %v4090_v35, %v6314_v34  ;;  %v4382_v53 = vrot.slane %v4378_v38, %v6314_v34  ;;  %v3940_v50 = vunpack.i.h.s16 %v3910_v46  ;;  %v5197_v32 = vpack.i.b16 %v3910_v46, %v3910_v46 }
 0x655   : > { %5910 = vmatpush3.bf16.msra.mxu0 %v6811_v20  ;;  %5913 = vmatprep.mubr.msk.bf16.mxu0 %vm6185_vm2, %v7516_v52  ;;  %v6162_v20 = vld [vmem:[%s7476_s5 + $0x24] sm:$0xff]   ;;  %v4190_v39 = vrot.slane %v4186_v11, %v6314_v34  ;;  %v4282_v48 = vpack.i.b16 %v3936_v43, %v3936_v43  ;;  %v4238_v55 = vrot.slane %v5191_v41, %v6314_v34  ;;  %v3942_v8 = vunpack.i.h.s16 %v3912_v12 }
 0x656   : > { %5911 = vmatprep.subr.bf16.mxu0 %v7516_v52  ;;  %v4474_v44 = vpack.i.b16 %v3940_v50, %v3940_v50  ;;  %v4430_v56 = vrot.slane %v5197_v32, %v6314_v34  ;;  %v3861_v17 = vmul.f32 %v6160_v45, %v7232_v14  ;;  %v5200_v63 = vpack.i.b16 %v3912_v12, %v3912_v12  ;;  %v6175_v11 = vld [vmem:[%s7476_s5 + $0xc0] sm:$0xff]  }
 0x657   : > { %5904 = vmatpush3.bf16.msra.mxu1 %v6161_v22  ;;  %v4286_v5 = vrot.slane %v4282_v48, %v6314_v34  ;;  %v4570_v36 = vpack.i.b16 %v3942_v8, %v3942_v8  ;;  %v3914_v26 = vcombine.high %v3910_v46, %v3910_v46 }
 0x658   : > { %5917 = vmatprep.subr.bf16.mxu1 %v7516_v52  ;;  %v4478_v28 = vrot.slane %v4474_v44, %v6314_v34  ;;  %v3863_v14 = vpack.c.bf16 %v3861_v17, %v3861_v17  ;;  %v4526_v59 = vrot.slane %v5200_v63, %v6314_v34 }
 0x659   : > { %5912 = vmatpush3.bf16.msra.mxu0 %v6162_v20  ;;  %v4574_v23 = vrot.slane %v4570_v36, %v6314_v34  ;;  %v3944_v35 = vunpack.i.h.s16 %v3914_v26  ;;  %v5203_v22 = vpack.i.b16 %v3914_v26, %v3914_v26 }
 0x65a   : > { %5906 = vmatmul.mubr.msk.bf16.vlgmr.msra.gmra.mxu1 %vm1696_vm11, %v4046_v1  ;;  %5925 = vmatprep.subr.bf16.mxu0 %v7516_v52  ;;  %v3921_v21 = vrot.slane %v3863_v14, %v6302_v29  ;;  %v4765_v1 = vpop.permute.xlu0 %4764 }
 0x65b   : > { %5918 = vmatpush3.bf16.msra.mxu1 %v6837_v10  ;;  %5921 = vmatprep.mubr.msk.bf16.mxu1 %vm6185_vm2, %v7516_v52  ;;  %v6163_v10 = vld [vmem:[%s7476_s5 + $0x30] sm:$0xff]   ;;  %v4666_v20 = vpack.i.b16 %v3944_v35, %v3944_v35  ;;  %v4622_v9 = vrot.slane %v5203_v22, %v6314_v34 }
 0x65c   : > { %5914 = vmatmul.mubr.msk.bf16.vlgmr.msra.gmra.mxu0 %vm1696_vm11, %v4094_v16  ;;  %5919 = vmatprep.subr.bf16.mxu1 %v7516_v52  ;;  %v4822_v16 = vand.u32 %v4765_v1, %v6740_v33  ;;  %v3928_v0 = vrot.slane %v3921_v21, %v6302_v29  ;;  %v4763_v33 = vpop.permute.xlu1 %4762 }
 0x65d   : > { %5926 = vmatpush3.bf16.msra.mxu0 %v6842_v40  ;;  %5929 = vmatprep.mubr.msk.bf16.mxu0 %vm6185_vm2, %v7516_v52  ;;  %v6164_v40 = vld [vmem:[%s7476_s5 + $0x3c] sm:$0xff]   ;;  %v4670_v49 = vrot.slane %v4666_v20, %v6314_v34 }
 0x65e   : > { %5927 = vmatprep.subr.bf16.mxu0 %v7516_v52  ;;  %v5206_v29 = vpack.i.b16 %v3928_v0, %v3928_v0 }
 0x65f   : > { %5920 = vmatpush3.bf16.msra.mxu1 %v6163_v10 }
 0x660   : > { %5933 = vmatprep.subr.bf16.mxu1 %v7516_v52 }
 0x661   : > { %5928 = vmatpush3.bf16.msra.mxu0 %v6164_v40 }
 0x662   : > { %5922 = vmatmul.mubr.msk.bf16.vlgmr.msra.gmra.mxu1 %vm1696_vm11, %v4142_v15  ;;  %5941 = vmatprep.subr.bf16.mxu0 %v7516_v52 }
 0x663   : > { %5934 = vmatpush3.bf16.msra.mxu1 %v6871_v58  ;;  %5937 = vmatprep.mubr.msk.bf16.mxu1 %vm6185_vm2, %v7516_v52  ;;  %v6165_v58 = vld [vmem:[%s7476_s5 + $0x48] sm:$0xff]  }
 0x664   : > { %5930 = vmatmul.mubr.msk.bf16.vlgmr.msra.gmra.mxu0 %vm1696_vm11, %v4190_v39  ;;  %5935 = vmatprep.subr.bf16.mxu1 %v7516_v52 }
 0x665   : > { %5942 = vmatpush3.bf16.msra.mxu0 %v6876_v30  ;;  %5945 = vmatprep.mubr.msk.bf16.mxu0 %vm6185_vm2, %v7516_v52  ;;  %v6166_v30 = vld [vmem:[%s7476_s5 + $0x54] sm:$0xff]  }
 0x666   : > { %5943 = vmatprep.subr.bf16.mxu0 %v7516_v52 }
 0x667   : > { %5936 = vmatpush3.bf16.msra.mxu1 %v6165_v58 }
 0x668   : > { %5949 = vmatprep.subr.bf16.mxu1 %v7516_v52 }
 0x669   : > { %5944 = vmatpush3.bf16.msra.mxu0 %v6166_v30 }
 0x66a   : > { %5938 = vmatmul.mubr.msk.bf16.vlgmr.msra.gmra.mxu1 %vm1696_vm11, %v4238_v55  ;;  %5957 = vmatprep.subr.bf16.mxu0 %v7516_v52 }
 0x66b   : > { %5950 = vmatpush3.bf16.msra.mxu1 %v6905_v42  ;;  %5953 = vmatprep.mubr.msk.bf16.mxu1 %vm6185_vm2, %v7516_v52  ;;  %v6167_v42 = vld [vmem:[%s7476_s5 + $0x60] sm:$0xff]  }
 0x66c   : > { %5946 = vmatmul.mubr.msk.bf16.vlgmr.msra.gmra.mxu0 %vm1696_vm11, %v4286_v5  ;;  %5951 = vmatprep.subr.bf16.mxu1 %v7516_v52 }
 0x66d   : > { %5958 = vmatpush3.bf16.msra.mxu0 %v6910_v51  ;;  %5961 = vmatprep.mubr.msk.bf16.mxu0 %vm6185_vm2, %v7516_v52  ;;  %v6168_v51 = vld [vmem:[%s7476_s5 + $0x6c] sm:$0xff]  }
 0x66e   : > { %5959 = vmatprep.subr.bf16.mxu0 %v7516_v52 }
 0x66f   : > { %5952 = vmatpush3.bf16.msra.mxu1 %v6167_v42 }
 0x670   : > { %5965 = vmatprep.subr.bf16.mxu1 %v7516_v52 }
 0x671   : > { %5960 = vmatpush3.bf16.msra.mxu0 %v6168_v51 }
 0x672   : > { %5954 = vmatmul.mubr.msk.bf16.vlgmr.msra.gmra.mxu1 %vm1696_vm11, %v4334_v2  ;;  %5973 = vmatprep.subr.bf16.mxu0 %v7516_v52 }
 0x673   : > { %5966 = vmatpush3.bf16.msra.mxu1 %v6938_v31  ;;  %5969 = vmatprep.mubr.msk.bf16.mxu1 %vm6185_vm2, %v7516_v52  ;;  %v6169_v31 = vld [vmem:[%s7476_s5 + $0x78] sm:$0xff]  }
 0x674   : > { %5962 = vmatmul.mubr.msk.bf16.vlgmr.msra.gmra.mxu0 %vm1696_vm11, %v4382_v53  ;;  %5967 = vmatprep.subr.bf16.mxu1 %v7516_v52 }
 0x675   : > { %5974 = vmatpush3.bf16.msra.mxu0 %v6943_v54  ;;  %5977 = vmatprep.mubr.msk.bf16.mxu0 %vm6185_vm2, %v7516_v52  ;;  %v6170_v54 = vld [vmem:[%s7476_s5 + $0x84] sm:$0xff]  }
 0x676   : > { %5975 = vmatprep.subr.bf16.mxu0 %v7516_v52 }
 0x677   : > { %5968 = vmatpush3.bf16.msra.mxu1 %v6169_v31 }
 0x678   : > { %5981 = vmatprep.subr.bf16.mxu1 %v7516_v52 }
 0x679   : > { %5976 = vmatpush3.bf16.msra.mxu0 %v6170_v54 }
 0x67a   : > { %5970 = vmatmul.mubr.msk.bf16.vlgmr.msra.gmra.mxu1 %vm1696_vm11, %v4430_v56  ;;  %5989 = vmatprep.subr.bf16.mxu0 %v7516_v52 }
 0x67b   : > { %5982 = vmatpush3.bf16.msra.mxu1 %v6970_v37  ;;  %5985 = vmatprep.mubr.msk.bf16.mxu1 %vm6185_vm2, %v7516_v52  ;;  %v6171_v37 = vld [vmem:[%s7476_s5 + $0x90] sm:$0xff]  }
 0x67c   : > { %5978 = vmatmul.mubr.msk.bf16.vlgmr.msra.gmra.mxu0 %vm1696_vm11, %v4478_v28  ;;  %5983 = vmatprep.subr.bf16.mxu1 %v7516_v52 }
 0x67d   : > { %5990 = vmatpush3.bf16.msra.mxu0 %v6975_v4  ;;  %5993 = vmatprep.mubr.msk.bf16.mxu0 %vm6185_vm2, %v7516_v52  ;;  %v6172_v4 = vld [vmem:[%s7476_s5 + $0x9c] sm:$0xff]  }
 0x67e   : > { %5991 = vmatprep.subr.bf16.mxu0 %v7516_v52 }
 0x67f   : > { %5984 = vmatpush3.bf16.msra.mxu1 %v6171_v37 }
 0x680   : > { %5997 = vmatprep.subr.bf16.mxu1 %v7516_v52 }
 0x681   : > { %5992 = vmatpush3.bf16.msra.mxu0 %v6172_v4 }
 0x682   : > { %5986 = vmatmul.mubr.msk.bf16.vlgmr.msra.gmra.mxu1 %vm1696_vm11, %v4526_v59  ;;  %6005 = vmatprep.subr.bf16.mxu0 %v7516_v52 }
 0x683   : > { %5998 = vmatpush3.bf16.msra.mxu1 %v7003_v60  ;;  %6001 = vmatprep.mubr.msk.bf16.mxu1 %vm6185_vm2, %v7516_v52  ;;  %v6173_v60 = vld [vmem:[%s7476_s5 + $0xa8] sm:$0xff]  }
 0x684   : > { %5994 = vmatmul.mubr.msk.bf16.vlgmr.msra.gmra.mxu0 %vm1696_vm11, %v4574_v23  ;;  %5999 = vmatprep.subr.bf16.mxu1 %v7516_v52 }
 0x685   : > { %6006 = vmatpush3.bf16.msra.mxu0 %v7008_v6  ;;  %6009 = vmatprep.mubr.msk.bf16.mxu0 %vm6185_vm2, %v7516_v52  ;;  %v6174_v6 = vld [vmem:[%s7476_s5 + $0xb4] sm:$0xff]  }
 0x686   : > { %6007 = vmatprep.subr.bf16.mxu0 %v7516_v52 }
 0x687   : > { %6000 = vmatpush3.bf16.msra.mxu1 %v6173_v60 }
 0x688   : > { %6013 = vmatprep.subr.bf16.mxu1 %v7516_v52 }
 0x689   : > { %6008 = vmatpush3.bf16.msra.mxu0 %v6174_v6 }
 0x68a   : > { %6021 = vmatprep.subr.bf16.mxu0 %v4822_v16  ;;  %6002 = vmatmul.mubr.msk.bf16.vlgmr.msra.gmra.mxu1 %vm1696_vm11, %v4622_v9 }
 0x68b   : > { %6014 = vmatpush3.bf16.msra.mxu1 %v7033_v24  ;;  %6017 = vmatprep.mubr.msk.bf16.mxu1 %vm6185_vm2, %v7516_v52  ;;  %v4718_v24 = vrot.slane %v5206_v29, %v6314_v34 }
 0x68c   : > { %6010 = vmatmul.mubr.msk.bf16.vlgmr.msra.gmra.mxu0 %vm1696_vm11, %v4670_v49  ;;  %6015 = vmatprep.subr.bf16.mxu1 %v7516_v52 }
 0x68d   : > { %6022 = vmatpush3.bf16.msra.mxu0 %v4822_v16  ;;  %6025 = vmatprep.mubr.msk.bf16.mxu0 %vm1696_vm11, %v7238_v25 }
 0x68e   : > { %6023 = vmatprep.subr.bf16.mxu0 %v4763_v33 }
 0x68f   : > { %6016 = vmatpush3.bf16.msra.mxu1 %v6175_v11 }
 0x691   : > { %6024 = vmatpush3.bf16.msra.mxu0 %v4763_v33 }
 0x692   : > { %6018 = vmatmul.mubr.msk.bf16.vlgmr.msra.gmra.mxu1 %vm1696_vm11, %v4718_v24 }
 0x694   : > { %6026 = vmatmul.mubr.msk.bf16.vlgmr.msra.gmra.mxu0 %vm1696_vm11, %v3863_v14 }
 0x712   : > { %v7406_v52 = vpop.f32.mrf.mxu1 }
 0x714   : > { %v5891_v13 = vpop.f32.mrf.mxu1  ;;  %v7408_v10 = vpop.f32.mrf.mxu0 }
 0x715   : > { %v4784_v6 = vrot.slane %v7408_v10, 7  ;;  %v6135_v13 = vld [vmem:[%s7473_s2 + $0x8] sm:$0xff]  }
 0x716   : > { %v3991_v15 = vpop.f32.mrf.mxu1  ;;  %v5899_v25 = vpop.f32.mrf.mxu0  ;;  %6029 = vmatprep.subr.bf16.mxu1 %v6135_v13 }
 0x717   : > { %6030 = vmatpush3.bf16.msra.mxu1 %v6135_v13 }
 0x718   : > { %v5892_v40 = vpop.f32.mrf.mxu1  ;;  %v4039_v27 = vpop.f32.mrf.mxu0 }
 0x719   : > { %v4785_v40 = vsel %vm1599_vm3, %v4784_v6, %v7406_v52 }
 0x71a   : > { %v5900_v39 = vpop.f32.mrf.mxu0  ;;  %v7410_v43 = vpop.f32.mrf.mxu1 }
 0x71b   : > { %v4786_v11 = vrot.slane %v7410_v43, 6 }
 0x71c   : > { %v5907_v41 = vpop.f32.mrf.mxu1  ;;  %v7412_v47 = vpop.f32.mrf.mxu0 }
 0x71d   : > { %v4788_v27 = vrot.slane %v7412_v47, 5  ;;  %v4787_v43 = vsel %vm1602_vm4, %v4786_v11, %v4785_v40 }
 0x71e   : > { %v4087_v34 = vpop.f32.mrf.mxu1  ;;  %v5915_v48 = vpop.f32.mrf.mxu0 }
 0x720   : > { %v5908_v58 = vpop.f32.mrf.mxu1  ;;  %v4135_v55 = vpop.f32.mrf.mxu0 }
 0x722   : > { %v5916_v57 = vpop.f32.mrf.mxu0  ;;  %v7414_v30 = vpop.f32.mrf.mxu1 }
 0x723   : > { %v4790_v48 = vrot.slane %v7414_v30, 4 }
 0x724   : > { %v5923_v62 = vpop.f32.mrf.mxu1  ;;  %v7416_v5 = vpop.f32.mrf.mxu0 }
 0x725   : > { %v4792_v52 = vrot.slane %v7416_v5, 3 }
 0x726   : > { %v4183_v18 = vpop.f32.mrf.mxu1  ;;  %v5931_v19 = vpop.f32.mrf.mxu0 }
 0x727   : > { %v4789_v18 = vsel %vm1605_vm5, %v4788_v27, %v4787_v43 }
 0x728   : > { %v5924_v46 = vpop.f32.mrf.mxu1  ;;  %v4231_v38 = vpop.f32.mrf.mxu0 }
 0x72a   : > { %v5932_v42 = vpop.f32.mrf.mxu0  ;;  %v7418_v2 = vpop.f32.mrf.mxu1 }
 0x72b   : > { %v4791_v42 = vsel %vm1608_vm6, %v4790_v48, %v4789_v18 }
 0x72c   : > { %v5939_v51 = vpop.f32.mrf.mxu1  ;;  %v7420_v53 = vpop.f32.mrf.mxu0  ;;  %v4793_v5 = vsel %vm1611_vm7, %v4792_v52, %v4791_v42 }
 0x72d   : > { %v4794_v51 = vrot.slane %v7418_v2, 2 }
 0x72e   : > { %v4279_v50 = vpop.f32.mrf.mxu1  ;;  %v5947_v32 = vpop.f32.mrf.mxu0 }
 0x72f   : > { %v4795_v2 = vsel %vm1614_vm8, %v4794_v51, %v4793_v5 }
 0x730   : > { %v5940_v44 = vpop.f32.mrf.mxu1  ;;  %v4327_v12 = vpop.f32.mrf.mxu0 }
 0x732   : > { %v5948_v31 = vpop.f32.mrf.mxu0  ;;  %v4372_v56 = vpop.f32.mrf.mxu1 }
 0x733   : > { %v6136_v31 = vld [vmem:[%s7473_s2] sm:$0xff]  }
 0x734   : > { %v5955_v45 = vpop.f32.mrf.mxu1  ;;  %v4420_v54 = vpop.f32.mrf.mxu0  ;;  %6031 = vmatprep.subr.bf16.mxu1 %v6136_v31 }
 0x735   : > { %v4798_v49 = vrot.slane %v4420_v54, 7  ;;  %6032 = vmatpush3.bf16.msra.mxu1 %v6136_v31 }
 0x736   : > { %v4375_v28 = vpop.f32.mrf.mxu1  ;;  %v5963_v8 = vpop.f32.mrf.mxu0 }
 0x737   : > { %v4799_v10 = vsel %vm1599_vm3, %v4798_v49, %v4372_v56  ;;  %v4796_v56 = vrot.slane %v7420_v53, 1 }
 0x738   : > { %v5956_v17 = vpop.f32.mrf.mxu1  ;;  %v4423_v63 = vpop.f32.mrf.mxu0 }
 0x73a   : > { %v5964_v36 = vpop.f32.mrf.mxu0  ;;  %v4468_v26 = vpop.f32.mrf.mxu1 }
 0x73b   : > { %v4800_v24 = vrot.slane %v4468_v26, 6  ;;  %v4797_v26 = vsel %vm1617_vm9, %v4796_v56, %v4795_v2 }
 0x73c   : > { %v5971_v37 = vpop.f32.mrf.mxu1  ;;  %v4516_v14 = vpop.f32.mrf.mxu0 }
 0x73d   : > { %v4802_v39 = vrot.slane %v4516_v14, 5  ;;  %v4801_v58 = vsel %vm1602_vm4, %v4800_v24, %v4799_v10 }
 0x73e   : > { %v4471_v59 = vpop.f32.mrf.mxu1  ;;  %v5979_v4 = vpop.f32.mrf.mxu0 }
 0x73f   : > { %v4803_v47 = vsel %vm1605_vm5, %v4802_v39, %v4801_v58 }
 0x740   : > { %v5972_v23 = vpop.f32.mrf.mxu1  ;;  %v4519_v35 = vpop.f32.mrf.mxu0 }
 0x742   : > { %v5980_v21 = vpop.f32.mrf.mxu0  ;;  %v4564_v22 = vpop.f32.mrf.mxu1 }
 0x743   : > { %v4804_v55 = vrot.slane %v4564_v22, 4 }
 0x744   : > { %v5987_v1 = vpop.f32.mrf.mxu1  ;;  %v4612_v20 = vpop.f32.mrf.mxu0 }
 0x745   : > { %v4806_v19 = vrot.slane %v4612_v20, 3  ;;  %v4805_v30 = vsel %vm1608_vm6, %v4804_v55, %v4803_v47 }
 0x746   : > { %v4567_v60 = vpop.f32.mrf.mxu1  ;;  %v5995_v16 = vpop.f32.mrf.mxu0 }
 0x747   : > { %v4807_v45 = vsel %vm1611_vm7, %v4806_v19, %v4805_v30 }
 0x748   : > { %v5988_v0 = vpop.f32.mrf.mxu1  ;;  %v4615_v9 = vpop.f32.mrf.mxu0 }
 0x749   : > { %v5210_v9 = vld [vmem:[%s7474_s3] ss:$0 sm:$0xff] }
 0x74a   : > { %v5996_v29 = vpop.f32.mrf.mxu0  ;;  %v4660_v33 = vpop.f32.mrf.mxu1 }
 0x74b   : > { %v4808_v50 = vrot.slane %v4660_v33, 2 }
 0x74c   : > { %v6003_v15 = vpop.f32.mrf.mxu1  ;;  %v4708_v25 = vpop.f32.mrf.mxu0 }
 0x74d   : > { %v4810_v54 = vrot.slane %v4708_v25, 1  ;;  %v4809_v17 = vsel %vm1614_vm8, %v4808_v50, %v4807_v45 }
 0x74e   : > { %v4663_v41 = vpop.f32.mrf.mxu1  ;;  %v6011_v34 = vpop.f32.mrf.mxu0 }
 0x74f   : > { %v4811_v37 = vsel %vm1617_vm9, %v4810_v54, %v4809_v17 }
 0x750   : > { %v6004_v57 = vpop.f32.mrf.mxu1  ;;  %v4711_v62 = vpop.f32.mrf.mxu0 }
 0x752   : > { %v6012_v46 = vpop.f32.mrf.mxu0  ;;  %v4756_v38 = vpop.f32.mrf.mxu1 }
 0x754   : > { %v6019_v32 = vpop.f32.mrf.mxu1  ;;  %v6027_v44 = vpop.f32.mrf.mxu0 }
 0x755   : > { %v4867_v12 = vadd.f32 %v6027_v44, %v4756_v38 }
 0x756   : > { %v4759_v28 = vpop.f32.mrf.mxu1  ;;  %v4858_v8 = vpop.f32.mrf.mxu0 }
 0x757   : > { %4879 = vrot.lane.b32.xlu0 %v4867_v12, %s6193_s14  ;;  %v4859_v14 = vadd.f32 %v4858_v8, %v4797_v26 }
 0x758   : > { %v6020_v63 = vpop.f32.mrf.mxu1  ;;  %v6028_v36 = vpop.f32.mrf.mxu0 }
 0x75a   : > { %v4861_v53 = vpop.f32.mrf.mxu0 }
 0x75b   : > { %v4862_v59 = vadd.f32 %v4861_v53, %v4811_v37 }
 0x75d   : > { %v6060_v4 = vpack.i.bf16 %v4862_v59, %v4859_v14 }
 0x75f   : > { %6061 = vrot.lane.b32.xlu1 %v6060_v4, %s6193_s14 }
 0x7c9   : > { %v4880_v23 = vpop.permute.xlu0 %4879 }
 0x7ca   : > { %v4886_v1 = vsel %vm533_vm1, %v7207_v61, %v4880_v23 }
 0x7cb   : > { %v4888_v0 = vpack.c.bf16 %v4886_v1, %v4886_v1 }
 0x7d1   : > { %v6062_v35 = vpop.permute.xlu1 %6061 }
 0x7d2   : > { %v6064_v21 = vunpack.i.h.bf16 %v6062_v35  ;;  %v6063_v22 = vunpack.i.l.bf16 %v6062_v35 }
 0x7d4   : > { %v4885_v20 = vsel %vm533_vm1, %v7211_v3, %v6064_v21  ;;  %v4884_v60 = vsel %vm533_vm1, %v7209_v7, %v6063_v22 }
 0x7d5   : > { %v4887_v16 = vpack.c.bf16 %v4885_v20, %v4884_v60 }
 0x7d7   : > { %6033 = vmatprep.mubr.msk.bf16.mxu1 %vm274_vm0, %v4887_v16 }
 0x7d8   : > { %6034 = vmatmul.mubr.msk.bf16.vlgmr.msra.gmra.mxu1 %vm274_vm0, %v4888_v0 }
 0x898   : > { %v6035_v61 = vpop.f32.mrf.mxu1 }
 0x899   : > { %v4961_v3 = vadd.f32 %v6035_v61, %v5210_v9 }
 0x89a   : > { %v4952_v6 = vpop.f32.mrf.mxu1 }
 0x89b   : > { %4969 = vst.msk [vmem:[%s251_s19 + $0x10] sm:$0x1] %vm4968_vm13, %v4961_v3  ;;  %v4953_v7 = vadd.f32 %v5210_v9, %v4952_v6 }
 0x89c   : > { %v6036_v49 = vpop.f32.mrf.mxu1 }
 0x89d   : > { %4966 = vst.msk [vmem:[%s251_s19] sm:$0xff] %vm274_vm0, %v4953_v7 }
 0x89e   : > { %v4955_v29 = vpop.f32.mrf.mxu1 }
 0x89f   : > { %v4956_v33 = vadd.f32 %v5210_v9, %v4955_v29 }
 0x8a1   : > { %4967 = vst.msk [vmem:[%s251_s19 + $0x8] sm:$0xff] %vm274_vm0, %v4956_v33 }
 0x8a2 PF: > { %s16_s21 = sadd.s32 1, %s6182_s21  }
 0x8a3   : > { %p13_p4 = scmp.ge.s32.totalorder %s16_s21, 4  }
 0x8a5   :  { %15 = sbr.rel (!%p13_p4) target bundleno = 1 (0x1), region = 74 }

</bundles_post_ra>
